<compile_context>
chip_gen: v5e
topology: v5e:2x2
jax: 0.10.0
libtpu: 0.0.40
codegen_flags: <defaults>
</compile_context>

<pallas_src>
import functools

import jax
import jax.numpy as jnp
from jax import lax
from jax.experimental import pallas as pl
from jax.experimental.pallas import tpu as pltpu


_TAPS = tuple((kh, kw) for kh in range(3) for kw in range(3))


def _unet_block_strip_kernel(x_ref, w1_ref, b1_ref, w2_ref, b2_ref, o_ref,
                             hbuf_ref, *, th, width, slope):
    # x_ref   : (1, th+4, W+2, Cin)  bf16 padded input strip (2-row halo each
    #                                 side, 1 zero column each side)
    # w1_ref  : (9, Cin, Cmid) bf16     b1_ref : (1, Cmid) f32
    # w2_ref  : (9, Cmid, Cout) bf16    b2_ref : (1, Cout) f32
    # o_ref   : (1, th, W, Cout)
    # hbuf_ref: (th+2, W+2, Cmid)  VMEM scratch: conv1 output (incl. 1-row
    #           halo), stored zero-padded in W so conv2 taps read it directly.
    cin = x_ref.shape[-1]
    cmid = hbuf_ref.shape[-1]
    cout = o_ref.shape[-1]
    wp = width + 2
    r1 = th + 2                         # conv1 rows: strip + 1-row halo each side

    # ---------------- conv1: 9 accumulating MXU matmuls ----------------
    xs = x_ref[0]                       # (th+4, W+2, Cin) bf16
    acc1 = jnp.zeros((r1 * width, cmid), jnp.float32)
    for t, (kh, kw) in enumerate(_TAPS):
        tap = xs[kh:kh + r1, kw:kw + width, :].reshape(r1 * width, cin)
        acc1 = acc1 + jnp.dot(tap, w1_ref[t],
                              preferred_element_type=jnp.float32)
    h = acc1 + b1_ref[...]
    h = jnp.where(h >= 0, h, slope * h)                    # LeakyReLU

    # Intermediate stays in VMEM (never touches HBM).  Only the halo border of
    # the scratch is zeroed each step (not the whole buffer); doing it every
    # step keeps it correct under megacore "parallel" sharding.
    hbuf_ref[:, 1:width + 1, :] = h.reshape(r1, width, cmid).astype(hbuf_ref.dtype)
    zcol = jnp.zeros((r1, 1, cmid), hbuf_ref.dtype)
    hbuf_ref[:, 0:1, :] = zcol
    hbuf_ref[:, width + 1:width + 2, :] = zcol

    s = pl.program_id(1)
    zrow = jnp.zeros((1, wp, cmid), hbuf_ref.dtype)

    @pl.when(s == 0)                         # image top: conv2 sees zero pad
    def _zero_top():
        hbuf_ref[0:1, :, :] = zrow

    @pl.when(s == pl.num_programs(1) - 1)    # image bottom
    def _zero_bottom():
        hbuf_ref[r1 - 1:r1, :, :] = zrow

    # ---------------- conv2: 9 accumulating MXU matmuls ----------------
    acc2 = jnp.zeros((th * width, cout), jnp.float32)
    for t, (kh, kw) in enumerate(_TAPS):
        tap = hbuf_ref[kh:kh + th, kw:kw + width, :].reshape(th * width, cmid)
        acc2 = acc2 + jnp.dot(tap, w2_ref[t],
                              preferred_element_type=jnp.float32)
    out = acc2 + b2_ref[...]
    out = jnp.where(out >= 0, out, slope * out)
    o_ref[0] = out.reshape(th, width, cout).astype(o_ref.dtype)


def _pick_strip_rows(h, target=32):
    th = 1
    for d in range(1, min(h, target) + 1):
        if h % d == 0:
            th = d
    return th


def unet_conv_block(x_nchw, params, slope=0.2, strip_rows=None,
                    operand_dtype=jnp.bfloat16):
    """UNetConvBlock forward. Input/output in NCHW (PyTorch convention)."""
    w1, b1, w2, b2 = params                      # w*: (3, 3, Cin, Cout) HWIO
    n, cin, h, w = x_nchw.shape
    cmid = w1.shape[-1]
    cout = w2.shape[-1]

    th = strip_rows if strip_rows is not None else _pick_strip_rows(h)
    assert h % th == 0, "strip_rows must divide H"
    n_strips = h // th
    wp = w + 2

    # NCHW -> NHWC, zero pad (2-row / 1-col halo), cast MXU operands to bf16.
    x_nhwc = jnp.transpose(x_nchw, (0, 2, 3, 1)).astype(operand_dtype)
    x_pad = jnp.pad(x_nhwc, ((0, 0), (2, 2), (1, 1), (0, 0)))
    # Overlapping halo strips (stride th, height th+4) so the kernel input is a
    # plain non-overlapping BlockSpec block and keeps auto double-buffering.
    x_strips = jnp.stack(
        [x_pad[:, i * th:i * th + th + 4] for i in range(n_strips)], axis=1)
    x_strips = x_strips.reshape(n * n_strips, th + 4, wp, cin)

    w1m = w1.reshape(9, cin, cmid).astype(operand_dtype)
    w2m = w2.reshape(9, cmid, cout).astype(operand_dtype)
    b1r = b1.reshape(1, cmid).astype(jnp.float32)
    b2r = b2.reshape(1, cout).astype(jnp.float32)

    kernel = functools.partial(_unet_block_strip_kernel,
                               th=th, width=w, slope=slope)

    flops = 2 * n * h * w * 9 * (cin * cmid + cmid * cout)
    bytes_accessed = (x_strips.size * 2            # bf16 strips in
                      + n * h * w * cout * 4       # f32 out
                      + w1m.size * 2 + w2m.size * 2 + (cmid + cout) * 4)

    out_nhwc = pl.pallas_call(
        kernel,
        out_shape=jax.ShapeDtypeStruct((n, h, w, cout), x_nchw.dtype),
        grid_spec=pltpu.PrefetchScalarGridSpec(
            num_scalar_prefetch=0,
            grid=(n, n_strips),
            in_specs=[
                pl.BlockSpec((1, th + 4, wp, cin),
                             lambda i, j: (i * n_strips + j, 0, 0, 0)),
                pl.BlockSpec((9, cin, cmid), lambda i, j: (0, 0, 0)),
                pl.BlockSpec((1, cmid), lambda i, j: (0, 0)),
                pl.BlockSpec((9, cmid, cout), lambda i, j: (0, 0, 0)),
                pl.BlockSpec((1, cout), lambda i, j: (0, 0)),
            ],
            out_specs=pl.BlockSpec((1, th, w, cout), lambda i, j: (i, j, 0, 0)),
            scratch_shapes=[pltpu.VMEM((th + 2, wp, cmid), operand_dtype)],
        ),
        compiler_params=pltpu.CompilerParams(
            dimension_semantics=("parallel", "parallel"),
            # Strip size is chosen so per-step buffers fit comfortably; raise
            # per generation (<= ~half of physical VMEM on v7x) for big strips.
            vmem_limit_bytes=32 * 1024 * 1024,
        ),
        cost_estimate=pl.CostEstimate(flops=flops, transcendentals=0,
                                      bytes_accessed=bytes_accessed),
    )(x_strips, w1m, b1r, w2m, b2r)

    # NHWC -> NCHW to match the PyTorch module's output layout.
    return jnp.transpose(out_nhwc, (0, 3, 1, 2))


def init_params(key, in_size, out_size):
    """Deterministic parameter init (kaiming-uniform-like scale)."""
    k1, k2, k3, k4 = jax.random.split(key, 4)
    fan1 = in_size * 9
    fan2 = out_size * 9
    bound1 = 1.0 / jnp.sqrt(fan1)
    bound2 = 1.0 / jnp.sqrt(fan2)
    w1 = jax.random.uniform(k1, (3, 3, in_size, out_size), jnp.float32,
                            -bound1, bound1)
    b1 = jax.random.uniform(k2, (out_size,), jnp.float32, -bound1, bound1)
    w2 = jax.random.uniform(k3, (3, 3, out_size, out_size), jnp.float32,
                            -bound2, bound2)
    b2 = jax.random.uniform(k4, (out_size,), jnp.float32, -bound2, bound2)
    return w1, b1, w2, b2


def _reference(x_nchw, params, slope=0.2):
    """Pure-JAX f32 reference (lax.conv) for correctness check."""
    w1, b1, w2, b2 = params
    dn = lax.conv_dimension_numbers(x_nchw.shape, (3, 3, 1, 1),
                                    ("NCHW", "HWIO", "NCHW"))

    def conv(x, w, b):
        y = lax.conv_general_dilated(x, w, (1, 1), ((1, 1), (1, 1)),
                                     dimension_numbers=dn)
        y = y + b[None, :, None, None]
        return jnp.where(y >= 0, y, slope * y)

    h = conv(x_nchw, w1, b1)
    return conv(h, w2, b2)


if __name__ == "__main__":
    key = jax.random.PRNGKey(0)
    kx, kp = jax.random.split(key)

    N, Cin, Cout, H, W = 2, 4, 8, 16, 16
    x = jax.random.normal(kx, (N, Cin, H, W), dtype=jnp.float32)
    params = init_params(kp, Cin, Cout)

    # strip_rows=4 -> 4 strips per image: exercises first / interior / last
    # strip halo handling.
    out = unet_conv_block(x, params, slope=0.2, strip_rows=4)
    out = jax.block_until_ready(out)

    ref = _reference(x, params, slope=0.2)
    assert out.shape == (N, Cout, H, W)
    # bf16 MXU operands with f32 accumulation -> slightly looser tolerance
    # than a pure-f32 comparison.
    assert jnp.allclose(out, ref, atol=3e-2, rtol=3e-2), "mismatch vs reference"

    print("KERNEL_OK")
</pallas_src>

<mosaic_0001>
module attributes {stable_mosaic.version = 11 : i64} {
  func.func @_unet_block_strip_kernel(%arg0: i32, %arg1: i32, %arg2: memref<1x8x18x4xbf16, #tpu.memory_space<vmem>>, %arg3: memref<9x4x8xbf16, #tpu.memory_space<vmem>>, %arg4: memref<1x8xf32, #tpu.memory_space<vmem>>, %arg5: memref<9x8x8xbf16, #tpu.memory_space<vmem>>, %arg6: memref<1x8xf32, #tpu.memory_space<vmem>>, %arg7: memref<1x4x16x8xf32, #tpu.memory_space<vmem>>, %arg8: memref<6x18x8xbf16, #tpu.memory_space<vmem>>) attributes {dimension_semantics = [#tpu.dimension_semantics<parallel>, #tpu.dimension_semantics<parallel>], iteration_bounds = array<i64: 2, 4>, scalar_prefetch = 0 : i64, scratch_operands = 1 : i64, tpu.core_type = #tpu.core_type<tc>, window_params = [{transform_indices = @transform_0, window_bounds = array<i64: 1, 8, 18, 4>}, {pipeline_mode = #tpu.pipeline_mode<synchronous>, transform_indices = @transform_1, window_bounds = array<i64: 9, 4, 8>}, {pipeline_mode = #tpu.pipeline_mode<synchronous>, transform_indices = @transform_2, window_bounds = array<i64: 1, 8>}, {pipeline_mode = #tpu.pipeline_mode<synchronous>, transform_indices = @transform_3, window_bounds = array<i64: 9, 8, 8>}, {pipeline_mode = #tpu.pipeline_mode<synchronous>, transform_indices = @transform_4, window_bounds = array<i64: 1, 8>}, {transform_indices = @transform_5, window_bounds = array<i64: 1, 4, 16, 8>}]} {
    %c0 = arith.constant 0 : index
    %c0_0 = arith.constant 0 : index
    %c0_1 = arith.constant 0 : index
    %c0_2 = arith.constant 0 : index
    %0 = vector.load %arg2[%c0, %c0_0, %c0_1, %c0_2] : memref<1x8x18x4xbf16, #tpu.memory_space<vmem>>, vector<1x8x18x4xbf16>
    %1 = vector.shape_cast %0 : vector<1x8x18x4xbf16> to vector<8x18x4xbf16>
    %cst = arith.constant 0.000000e+00 : f32
    %2 = vector.broadcast %cst : f32 to vector<96x8xf32>
    %3 = vector.extract_strided_slice %1 {offsets = [0, 0, 0], sizes = [6, 16, 4], strides = [1, 1, 1]} : vector<8x18x4xbf16> to vector<6x16x4xbf16>
    %4 = vector.shape_cast %3 : vector<6x16x4xbf16> to vector<96x4xbf16>
    %c0_3 = arith.constant 0 : index
    %c0_4 = arith.constant 0 : index
    %c0_5 = arith.constant 0 : index
    %5 = vector.load %arg3[%c0_3, %c0_4, %c0_5] : memref<9x4x8xbf16, #tpu.memory_space<vmem>>, vector<1x4x8xbf16>
    %6 = vector.shape_cast %5 : vector<1x4x8xbf16> to vector<4x8xbf16>
    %cst_6 = arith.constant dense<0.000000e+00> : vector<96x8xf32>
    %7 = tpu.matmul %4, %6, %cst_6 {dimension_numbers = #tpu.dot_dimension_numbers<[1], [0], [0], [1], [0, 0, 1, 1], [], []>} : vector<96x4xbf16>, vector<4x8xbf16>, vector<96x8xf32> -> vector<96x8xf32>
    %8 = arith.addf %2, %7 : vector<96x8xf32>
    %9 = vector.extract_strided_slice %1 {offsets = [0, 1, 0], sizes = [6, 16, 4], strides = [1, 1, 1]} : vector<8x18x4xbf16> to vector<6x16x4xbf16>
    %10 = vector.shape_cast %9 : vector<6x16x4xbf16> to vector<96x4xbf16>
    %c1 = arith.constant 1 : index
    %c0_7 = arith.constant 0 : index
    %c0_8 = arith.constant 0 : index
    %11 = vector.load %arg3[%c1, %c0_7, %c0_8] : memref<9x4x8xbf16, #tpu.memory_space<vmem>>, vector<1x4x8xbf16>
    %12 = vector.shape_cast %11 : vector<1x4x8xbf16> to vector<4x8xbf16>
    %cst_9 = arith.constant dense<0.000000e+00> : vector<96x8xf32>
    %13 = tpu.matmul %10, %12, %cst_9 {dimension_numbers = #tpu.dot_dimension_numbers<[1], [0], [0], [1], [0, 0, 1, 1], [], []>} : vector<96x4xbf16>, vector<4x8xbf16>, vector<96x8xf32> -> vector<96x8xf32>
    %14 = arith.addf %8, %13 : vector<96x8xf32>
    %15 = vector.extract_strided_slice %1 {offsets = [0, 2, 0], sizes = [6, 16, 4], strides = [1, 1, 1]} : vector<8x18x4xbf16> to vector<6x16x4xbf16>
    %16 = vector.shape_cast %15 : vector<6x16x4xbf16> to vector<96x4xbf16>
    %c2 = arith.constant 2 : index
    %c0_10 = arith.constant 0 : index
    %c0_11 = arith.constant 0 : index
    %17 = vector.load %arg3[%c2, %c0_10, %c0_11] : memref<9x4x8xbf16, #tpu.memory_space<vmem>>, vector<1x4x8xbf16>
    %18 = vector.shape_cast %17 : vector<1x4x8xbf16> to vector<4x8xbf16>
    %cst_12 = arith.constant dense<0.000000e+00> : vector<96x8xf32>
    %19 = tpu.matmul %16, %18, %cst_12 {dimension_numbers = #tpu.dot_dimension_numbers<[1], [0], [0], [1], [0, 0, 1, 1], [], []>} : vector<96x4xbf16>, vector<4x8xbf16>, vector<96x8xf32> -> vector<96x8xf32>
    %20 = arith.addf %14, %19 : vector<96x8xf32>
    %21 = vector.extract_strided_slice %1 {offsets = [1, 0, 0], sizes = [6, 16, 4], strides = [1, 1, 1]} : vector<8x18x4xbf16> to vector<6x16x4xbf16>
    %22 = vector.shape_cast %21 : vector<6x16x4xbf16> to vector<96x4xbf16>
    %c3 = arith.constant 3 : index
    %c0_13 = arith.constant 0 : index
    %c0_14 = arith.constant 0 : index
    %23 = vector.load %arg3[%c3, %c0_13, %c0_14] : memref<9x4x8xbf16, #tpu.memory_space<vmem>>, vector<1x4x8xbf16>
    %24 = vector.shape_cast %23 : vector<1x4x8xbf16> to vector<4x8xbf16>
    %cst_15 = arith.constant dense<0.000000e+00> : vector<96x8xf32>
    %25 = tpu.matmul %22, %24, %cst_15 {dimension_numbers = #tpu.dot_dimension_numbers<[1], [0], [0], [1], [0, 0, 1, 1], [], []>} : vector<96x4xbf16>, vector<4x8xbf16>, vector<96x8xf32> -> vector<96x8xf32>
    %26 = arith.addf %20, %25 : vector<96x8xf32>
    %27 = vector.extract_strided_slice %1 {offsets = [1, 1, 0], sizes = [6, 16, 4], strides = [1, 1, 1]} : vector<8x18x4xbf16> to vector<6x16x4xbf16>
    %28 = vector.shape_cast %27 : vector<6x16x4xbf16> to vector<96x4xbf16>
    %c4 = arith.constant 4 : index
    %c0_16 = arith.constant 0 : index
    %c0_17 = arith.constant 0 : index
    %29 = vector.load %arg3[%c4, %c0_16, %c0_17] : memref<9x4x8xbf16, #tpu.memory_space<vmem>>, vector<1x4x8xbf16>
    %30 = vector.shape_cast %29 : vector<1x4x8xbf16> to vector<4x8xbf16>
    %cst_18 = arith.constant dense<0.000000e+00> : vector<96x8xf32>
    %31 = tpu.matmul %28, %30, %cst_18 {dimension_numbers = #tpu.dot_dimension_numbers<[1], [0], [0], [1], [0, 0, 1, 1], [], []>} : vector<96x4xbf16>, vector<4x8xbf16>, vector<96x8xf32> -> vector<96x8xf32>
    %32 = arith.addf %26, %31 : vector<96x8xf32>
    %33 = vector.extract_strided_slice %1 {offsets = [1, 2, 0], sizes = [6, 16, 4], strides = [1, 1, 1]} : vector<8x18x4xbf16> to vector<6x16x4xbf16>
    %34 = vector.shape_cast %33 : vector<6x16x4xbf16> to vector<96x4xbf16>
    %c5 = arith.constant 5 : index
    %c0_19 = arith.constant 0 : index
    %c0_20 = arith.constant 0 : index
    %35 = vector.load %arg3[%c5, %c0_19, %c0_20] : memref<9x4x8xbf16, #tpu.memory_space<vmem>>, vector<1x4x8xbf16>
    %36 = vector.shape_cast %35 : vector<1x4x8xbf16> to vector<4x8xbf16>
    %cst_21 = arith.constant dense<0.000000e+00> : vector<96x8xf32>
    %37 = tpu.matmul %34, %36, %cst_21 {dimension_numbers = #tpu.dot_dimension_numbers<[1], [0], [0], [1], [0, 0, 1, 1], [], []>} : vector<96x4xbf16>, vector<4x8xbf16>, vector<96x8xf32> -> vector<96x8xf32>
    %38 = arith.addf %32, %37 : vector<96x8xf32>
    %39 = vector.extract_strided_slice %1 {offsets = [2, 0, 0], sizes = [6, 16, 4], strides = [1, 1, 1]} : vector<8x18x4xbf16> to vector<6x16x4xbf16>
    %40 = vector.shape_cast %39 : vector<6x16x4xbf16> to vector<96x4xbf16>
    %c6 = arith.constant 6 : index
    %c0_22 = arith.constant 0 : index
    %c0_23 = arith.constant 0 : index
    %41 = vector.load %arg3[%c6, %c0_22, %c0_23] : memref<9x4x8xbf16, #tpu.memory_space<vmem>>, vector<1x4x8xbf16>
    %42 = vector.shape_cast %41 : vector<1x4x8xbf16> to vector<4x8xbf16>
    %cst_24 = arith.constant dense<0.000000e+00> : vector<96x8xf32>
    %43 = tpu.matmul %40, %42, %cst_24 {dimension_numbers = #tpu.dot_dimension_numbers<[1], [0], [0], [1], [0, 0, 1, 1], [], []>} : vector<96x4xbf16>, vector<4x8xbf16>, vector<96x8xf32> -> vector<96x8xf32>
    %44 = arith.addf %38, %43 : vector<96x8xf32>
    %45 = vector.extract_strided_slice %1 {offsets = [2, 1, 0], sizes = [6, 16, 4], strides = [1, 1, 1]} : vector<8x18x4xbf16> to vector<6x16x4xbf16>
    %46 = vector.shape_cast %45 : vector<6x16x4xbf16> to vector<96x4xbf16>
    %c7 = arith.constant 7 : index
    %c0_25 = arith.constant 0 : index
    %c0_26 = arith.constant 0 : index
    %47 = vector.load %arg3[%c7, %c0_25, %c0_26] : memref<9x4x8xbf16, #tpu.memory_space<vmem>>, vector<1x4x8xbf16>
    %48 = vector.shape_cast %47 : vector<1x4x8xbf16> to vector<4x8xbf16>
    %cst_27 = arith.constant dense<0.000000e+00> : vector<96x8xf32>
    %49 = tpu.matmul %46, %48, %cst_27 {dimension_numbers = #tpu.dot_dimension_numbers<[1], [0], [0], [1], [0, 0, 1, 1], [], []>} : vector<96x4xbf16>, vector<4x8xbf16>, vector<96x8xf32> -> vector<96x8xf32>
    %50 = arith.addf %44, %49 : vector<96x8xf32>
    %51 = vector.extract_strided_slice %1 {offsets = [2, 2, 0], sizes = [6, 16, 4], strides = [1, 1, 1]} : vector<8x18x4xbf16> to vector<6x16x4xbf16>
    %52 = vector.shape_cast %51 : vector<6x16x4xbf16> to vector<96x4xbf16>
    %c8 = arith.constant 8 : index
    %c0_28 = arith.constant 0 : index
    %c0_29 = arith.constant 0 : index
    %53 = vector.load %arg3[%c8, %c0_28, %c0_29] : memref<9x4x8xbf16, #tpu.memory_space<vmem>>, vector<1x4x8xbf16>
    %54 = vector.shape_cast %53 : vector<1x4x8xbf16> to vector<4x8xbf16>
    %cst_30 = arith.constant dense<0.000000e+00> : vector<96x8xf32>
    %55 = tpu.matmul %52, %54, %cst_30 {dimension_numbers = #tpu.dot_dimension_numbers<[1], [0], [0], [1], [0, 0, 1, 1], [], []>} : vector<96x4xbf16>, vector<4x8xbf16>, vector<96x8xf32> -> vector<96x8xf32>
    %56 = arith.addf %50, %55 : vector<96x8xf32>
    %c0_31 = arith.constant 0 : index
    %c0_32 = arith.constant 0 : index
    %57 = vector.load %arg4[%c0_31, %c0_32] : memref<1x8xf32, #tpu.memory_space<vmem>>, vector<1x8xf32>
    %58 = vector.broadcast %57 : vector<1x8xf32> to vector<96x8xf32>
    %59 = arith.addf %56, %58 : vector<96x8xf32>
    %cst_33 = arith.constant 0.000000e+00 : f32
    %60 = vector.broadcast %cst_33 : f32 to vector<96x8xf32>
    %61 = arith.cmpf oge, %59, %60 : vector<96x8xf32>
    %cst_34 = arith.constant 2.000000e-01 : f32
    %62 = vector.broadcast %cst_34 : f32 to vector<96x8xf32>
    %63 = arith.mulf %62, %59 : vector<96x8xf32>
    %64 = arith.select %61, %59, %63 : vector<96x8xi1>, vector<96x8xf32>
    %65 = vector.shape_cast %64 : vector<96x8xf32> to vector<6x16x8xf32>
    %66 = arith.truncf %65 : vector<6x16x8xf32> to vector<6x16x8xbf16>
    %c0_35 = arith.constant 0 : index
    %c1_36 = arith.constant 1 : index
    %c0_37 = arith.constant 0 : index
    %67 = vector.load %arg8[%c0_35, %c1_36, %c0_37] : memref<6x18x8xbf16, #tpu.memory_space<vmem>>, vector<6x16x8xbf16>
    tpu.vector_store %arg8[%c0_35, %c1_36, %c0_37], %66 {strides = array<i32>} : memref<6x18x8xbf16, #tpu.memory_space<vmem>>, vector<6x16x8xbf16>,
    %cst_38 = arith.constant 0.000000e+00 : bf16
    %68 = vector.broadcast %cst_38 : bf16 to vector<6x1x8xbf16>
    %c0_39 = arith.constant 0 : index
    %c0_40 = arith.constant 0 : index
    %c0_41 = arith.constant 0 : index
    %69 = vector.load %arg8[%c0_39, %c0_40, %c0_41] : memref<6x18x8xbf16, #tpu.memory_space<vmem>>, vector<6x1x8xbf16>
    tpu.vector_store %arg8[%c0_39, %c0_40, %c0_41], %68 {strides = array<i32>} : memref<6x18x8xbf16, #tpu.memory_space<vmem>>, vector<6x1x8xbf16>,
    %c0_42 = arith.constant 0 : index
    %c17 = arith.constant 17 : index
    %c0_43 = arith.constant 0 : index
    %70 = vector.load %arg8[%c0_42, %c17, %c0_43] : memref<6x18x8xbf16, #tpu.memory_space<vmem>>, vector<6x1x8xbf16>
    tpu.vector_store %arg8[%c0_42, %c17, %c0_43], %68 {strides = array<i32>} : memref<6x18x8xbf16, #tpu.memory_space<vmem>>, vector<6x1x8xbf16>,
    %cst_44 = arith.constant 0.000000e+00 : bf16
    %71 = vector.broadcast %cst_44 : bf16 to vector<1x18x8xbf16>
    %c0_i32 = arith.constant 0 : i32
    %72 = arith.cmpi eq, %arg1, %c0_i32 : i32
    %73 = arith.extui %72 : i1 to i32
    %c0_i32_45 = arith.constant 0 : i32
    %74 = arith.cmpi ne, %73, %c0_i32_45 : i32
    scf.if %74 {
      %c0_119 = arith.constant 0 : index
      %c0_120 = arith.constant 0 : index
      %c0_121 = arith.constant 0 : index
      %145 = vector.load %arg8[%c0_119, %c0_120, %c0_121] : memref<6x18x8xbf16, #tpu.memory_space<vmem>>, vector<1x18x8xbf16>
      tpu.vector_store %arg8[%c0_119, %c0_120, %c0_121], %71 {strides = array<i32>} : memref<6x18x8xbf16, #tpu.memory_space<vmem>>, vector<1x18x8xbf16>,
    } else {
    }
    %c3_i32 = arith.constant 3 : i32
    %75 = arith.cmpi eq, %arg1, %c3_i32 : i32
    %76 = arith.extui %75 : i1 to i32
    %c0_i32_46 = arith.constant 0 : i32
    %77 = arith.cmpi ne, %76, %c0_i32_46 : i32
    scf.if %77 {
      %c5_119 = arith.constant 5 : index
      %c0_120 = arith.constant 0 : index
      %c0_121 = arith.constant 0 : index
      %145 = vector.load %arg8[%c5_119, %c0_120, %c0_121] : memref<6x18x8xbf16, #tpu.memory_space<vmem>>, vector<1x18x8xbf16>
      tpu.vector_store %arg8[%c5_119, %c0_120, %c0_121], %71 {strides = array<i32>} : memref<6x18x8xbf16, #tpu.memory_space<vmem>>, vector<1x18x8xbf16>,
    } else {
    }
    %cst_47 = arith.constant 0.000000e+00 : f32
    %78 = vector.broadcast %cst_47 : f32 to vector<64x8xf32>
    %c0_48 = arith.constant 0 : index
    %c0_49 = arith.constant 0 : index
    %c0_50 = arith.constant 0 : index
    %79 = vector.load %arg8[%c0_48, %c0_49, %c0_50] : memref<6x18x8xbf16, #tpu.memory_space<vmem>>, vector<4x16x8xbf16>
    %80 = vector.shape_cast %79 : vector<4x16x8xbf16> to vector<64x8xbf16>
    %c0_51 = arith.constant 0 : index
    %c0_52 = arith.constant 0 : index
    %c0_53 = arith.constant 0 : index
    %81 = vector.load %arg5[%c0_51, %c0_52, %c0_53] : memref<9x8x8xbf16, #tpu.memory_space<vmem>>, vector<1x8x8xbf16>
    %82 = vector.shape_cast %81 : vector<1x8x8xbf16> to vector<8x8xbf16>
    %cst_54 = arith.constant dense<0.000000e+00> : vector<64x8xf32>
    %83 = tpu.matmul %80, %82, %cst_54 {dimension_numbers = #tpu.dot_dimension_numbers<[1], [0], [0], [1], [0, 0, 1, 1], [], []>} : vector<64x8xbf16>, vector<8x8xbf16>, vector<64x8xf32> -> vector<64x8xf32>
    %84 = arith.addf %78, %83 : vector<64x8xf32>
    %c0_55 = arith.constant 0 : index
    %c1_56 = arith.constant 1 : index
    %c0_57 = arith.constant 0 : index
    %85 = vector.load %arg8[%c0_55, %c1_56, %c0_57] : memref<6x18x8xbf16, #tpu.memory_space<vmem>>, vector<4x16x8xbf16>
    %86 = vector.shape_cast %85 : vector<4x16x8xbf16> to vector<64x8xbf16>
    %c1_58 = arith.constant 1 : index
    %c0_59 = arith.constant 0 : index
    %c0_60 = arith.constant 0 : index
    %87 = vector.load %arg5[%c1_58, %c0_59, %c0_60] : memref<9x8x8xbf16, #tpu.memory_space<vmem>>, vector<1x8x8xbf16>
    %88 = vector.shape_cast %87 : vector<1x8x8xbf16> to vector<8x8xbf16>
    %cst_61 = arith.constant dense<0.000000e+00> : vector<64x8xf32>
    %89 = tpu.matmul %86, %88, %cst_61 {dimension_numbers = #tpu.dot_dimension_numbers<[1], [0], [0], [1], [0, 0, 1, 1], [], []>} : vector<64x8xbf16>, vector<8x8xbf16>, vector<64x8xf32> -> vector<64x8xf32>
    %90 = arith.addf %84, %89 : vector<64x8xf32>
    %c0_62 = arith.constant 0 : index
    %c2_63 = arith.constant 2 : index
    %c0_64 = arith.constant 0 : index
    %91 = vector.load %arg8[%c0_62, %c2_63, %c0_64] : memref<6x18x8xbf16, #tpu.memory_space<vmem>>, vector<4x16x8xbf16>
    %92 = vector.shape_cast %91 : vector<4x16x8xbf16> to vector<64x8xbf16>
    %c2_65 = arith.constant 2 : index
    %c0_66 = arith.constant 0 : index
    %c0_67 = arith.constant 0 : index
    %93 = vector.load %arg5[%c2_65, %c0_66, %c0_67] : memref<9x8x8xbf16, #tpu.memory_space<vmem>>, vector<1x8x8xbf16>
    %94 = vector.shape_cast %93 : vector<1x8x8xbf16> to vector<8x8xbf16>
    %cst_68 = arith.constant dense<0.000000e+00> : vector<64x8xf32>
    %95 = tpu.matmul %92, %94, %cst_68 {dimension_numbers = #tpu.dot_dimension_numbers<[1], [0], [0], [1], [0, 0, 1, 1], [], []>} : vector<64x8xbf16>, vector<8x8xbf16>, vector<64x8xf32> -> vector<64x8xf32>
    %96 = arith.addf %90, %95 : vector<64x8xf32>
    %c1_69 = arith.constant 1 : index
    %c0_70 = arith.constant 0 : index
    %c0_71 = arith.constant 0 : index
    %97 = vector.load %arg8[%c1_69, %c0_70, %c0_71] : memref<6x18x8xbf16, #tpu.memory_space<vmem>>, vector<4x16x8xbf16>
    %98 = vector.shape_cast %97 : vector<4x16x8xbf16> to vector<64x8xbf16>
    %c3_72 = arith.constant 3 : index
    %c0_73 = arith.constant 0 : index
    %c0_74 = arith.constant 0 : index
    %99 = vector.load %arg5[%c3_72, %c0_73, %c0_74] : memref<9x8x8xbf16, #tpu.memory_space<vmem>>, vector<1x8x8xbf16>
    %100 = vector.shape_cast %99 : vector<1x8x8xbf16> to vector<8x8xbf16>
    %cst_75 = arith.constant dense<0.000000e+00> : vector<64x8xf32>
    %101 = tpu.matmul %98, %100, %cst_75 {dimension_numbers = #tpu.dot_dimension_numbers<[1], [0], [0], [1], [0, 0, 1, 1], [], []>} : vector<64x8xbf16>, vector<8x8xbf16>, vector<64x8xf32> -> vector<64x8xf32>
    %102 = arith.addf %96, %101 : vector<64x8xf32>
    %c1_76 = arith.constant 1 : index
    %c1_77 = arith.constant 1 : index
    %c0_78 = arith.constant 0 : index
    %103 = vector.load %arg8[%c1_76, %c1_77, %c0_78] : memref<6x18x8xbf16, #tpu.memory_space<vmem>>, vector<4x16x8xbf16>
    %104 = vector.shape_cast %103 : vector<4x16x8xbf16> to vector<64x8xbf16>
    %c4_79 = arith.constant 4 : index
    %c0_80 = arith.constant 0 : index
    %c0_81 = arith.constant 0 : index
    %105 = vector.load %arg5[%c4_79, %c0_80, %c0_81] : memref<9x8x8xbf16, #tpu.memory_space<vmem>>, vector<1x8x8xbf16>
    %106 = vector.shape_cast %105 : vector<1x8x8xbf16> to vector<8x8xbf16>
    %cst_82 = arith.constant dense<0.000000e+00> : vector<64x8xf32>
    %107 = tpu.matmul %104, %106, %cst_82 {dimension_numbers = #tpu.dot_dimension_numbers<[1], [0], [0], [1], [0, 0, 1, 1], [], []>} : vector<64x8xbf16>, vector<8x8xbf16>, vector<64x8xf32> -> vector<64x8xf32>
    %108 = arith.addf %102, %107 : vector<64x8xf32>
    %c1_83 = arith.constant 1 : index
    %c2_84 = arith.constant 2 : index
    %c0_85 = arith.constant 0 : index
    %109 = vector.load %arg8[%c1_83, %c2_84, %c0_85] : memref<6x18x8xbf16, #tpu.memory_space<vmem>>, vector<4x16x8xbf16>
    %110 = vector.shape_cast %109 : vector<4x16x8xbf16> to vector<64x8xbf16>
    %c5_86 = arith.constant 5 : index
    %c0_87 = arith.constant 0 : index
    %c0_88 = arith.constant 0 : index
    %111 = vector.load %arg5[%c5_86, %c0_87, %c0_88] : memref<9x8x8xbf16, #tpu.memory_space<vmem>>, vector<1x8x8xbf16>
    %112 = vector.shape_cast %111 : vector<1x8x8xbf16> to vector<8x8xbf16>
    %cst_89 = arith.constant dense<0.000000e+00> : vector<64x8xf32>
    %113 = tpu.matmul %110, %112, %cst_89 {dimension_numbers = #tpu.dot_dimension_numbers<[1], [0], [0], [1], [0, 0, 1, 1], [], []>} : vector<64x8xbf16>, vector<8x8xbf16>, vector<64x8xf32> -> vector<64x8xf32>
    %114 = arith.addf %108, %113 : vector<64x8xf32>
    %c2_90 = arith.constant 2 : index
    %c0_91 = arith.constant 0 : index
    %c0_92 = arith.constant 0 : index
    %115 = vector.load %arg8[%c2_90, %c0_91, %c0_92] : memref<6x18x8xbf16, #tpu.memory_space<vmem>>, vector<4x16x8xbf16>
    %116 = vector.shape_cast %115 : vector<4x16x8xbf16> to vector<64x8xbf16>
    %c6_93 = arith.constant 6 : index
    %c0_94 = arith.constant 0 : index
    %c0_95 = arith.constant 0 : index
    %117 = vector.load %arg5[%c6_93, %c0_94, %c0_95] : memref<9x8x8xbf16, #tpu.memory_space<vmem>>, vector<1x8x8xbf16>
    %118 = vector.shape_cast %117 : vector<1x8x8xbf16> to vector<8x8xbf16>
    %cst_96 = arith.constant dense<0.000000e+00> : vector<64x8xf32>
    %119 = tpu.matmul %116, %118, %cst_96 {dimension_numbers = #tpu.dot_dimension_numbers<[1], [0], [0], [1], [0, 0, 1, 1], [], []>} : vector<64x8xbf16>, vector<8x8xbf16>, vector<64x8xf32> -> vector<64x8xf32>
    %120 = arith.addf %114, %119 : vector<64x8xf32>
    %c2_97 = arith.constant 2 : index
    %c1_98 = arith.constant 1 : index
    %c0_99 = arith.constant 0 : index
    %121 = vector.load %arg8[%c2_97, %c1_98, %c0_99] : memref<6x18x8xbf16, #tpu.memory_space<vmem>>, vector<4x16x8xbf16>
    %122 = vector.shape_cast %121 : vector<4x16x8xbf16> to vector<64x8xbf16>
    %c7_100 = arith.constant 7 : index
    %c0_101 = arith.constant 0 : index
    %c0_102 = arith.constant 0 : index
    %123 = vector.load %arg5[%c7_100, %c0_101, %c0_102] : memref<9x8x8xbf16, #tpu.memory_space<vmem>>, vector<1x8x8xbf16>
    %124 = vector.shape_cast %123 : vector<1x8x8xbf16> to vector<8x8xbf16>
    %cst_103 = arith.constant dense<0.000000e+00> : vector<64x8xf32>
    %125 = tpu.matmul %122, %124, %cst_103 {dimension_numbers = #tpu.dot_dimension_numbers<[1], [0], [0], [1], [0, 0, 1, 1], [], []>} : vector<64x8xbf16>, vector<8x8xbf16>, vector<64x8xf32> -> vector<64x8xf32>
    %126 = arith.addf %120, %125 : vector<64x8xf32>
    %c2_104 = arith.constant 2 : index
    %c2_105 = arith.constant 2 : index
    %c0_106 = arith.constant 0 : index
    %127 = vector.load %arg8[%c2_104, %c2_105, %c0_106] : memref<6x18x8xbf16, #tpu.memory_space<vmem>>, vector<4x16x8xbf16>
    %128 = vector.shape_cast %127 : vector<4x16x8xbf16> to vector<64x8xbf16>
    %c8_107 = arith.constant 8 : index
    %c0_108 = arith.constant 0 : index
    %c0_109 = arith.constant 0 : index
    %129 = vector.load %arg5[%c8_107, %c0_108, %c0_109] : memref<9x8x8xbf16, #tpu.memory_space<vmem>>, vector<1x8x8xbf16>
    %130 = vector.shape_cast %129 : vector<1x8x8xbf16> to vector<8x8xbf16>
    %cst_110 = arith.constant dense<0.000000e+00> : vector<64x8xf32>
    %131 = tpu.matmul %128, %130, %cst_110 {dimension_numbers = #tpu.dot_dimension_numbers<[1], [0], [0], [1], [0, 0, 1, 1], [], []>} : vector<64x8xbf16>, vector<8x8xbf16>, vector<64x8xf32> -> vector<64x8xf32>
    %132 = arith.addf %126, %131 : vector<64x8xf32>
    %c0_111 = arith.constant 0 : index
    %c0_112 = arith.constant 0 : index
    %133 = vector.load %arg6[%c0_111, %c0_112] : memref<1x8xf32, #tpu.memory_space<vmem>>, vector<1x8xf32>
    %134 = vector.broadcast %133 : vector<1x8xf32> to vector<64x8xf32>
    %135 = arith.addf %132, %134 : vector<64x8xf32>
    %cst_113 = arith.constant 0.000000e+00 : f32
    %136 = vector.broadcast %cst_113 : f32 to vector<64x8xf32>
    %137 = arith.cmpf oge, %135, %136 : vector<64x8xf32>
    %cst_114 = arith.constant 2.000000e-01 : f32
    %138 = vector.broadcast %cst_114 : f32 to vector<64x8xf32>
    %139 = arith.mulf %138, %135 : vector<64x8xf32>
    %140 = arith.select %137, %135, %139 : vector<64x8xi1>, vector<64x8xf32>
    %141 = vector.shape_cast %140 : vector<64x8xf32> to vector<4x16x8xf32>
    %c0_115 = arith.constant 0 : index
    %c0_116 = arith.constant 0 : index
    %c0_117 = arith.constant 0 : index
    %c0_118 = arith.constant 0 : index
    %142 = vector.load %arg7[%c0_115, %c0_116, %c0_117, %c0_118] : memref<1x4x16x8xf32, #tpu.memory_space<vmem>>, vector<1x4x16x8xf32>
    %143 = vector.shape_cast %142 : vector<1x4x16x8xf32> to vector<4x16x8xf32>
    %144 = vector.shape_cast %141 : vector<4x16x8xf32> to vector<1x4x16x8xf32>
    tpu.vector_store %arg7[%c0_115, %c0_116, %c0_117, %c0_118], %144 {strides = array<i32>} : memref<1x4x16x8xf32, #tpu.memory_space<vmem>>, vector<1x4x16x8xf32>,
    return
  }
  func.func @transform_0(%arg0: i32, %arg1: i32) -> (i32, i32, i32, i32) {
    %c4_i32 = arith.constant 4 : i32
    %0 = arith.muli %arg0, %c4_i32 : i32
    %1 = arith.addi %0, %arg1 : i32
    %c0_i32 = arith.constant 0 : i32
    %c0_i32_0 = arith.constant 0 : i32
    %c0_i32_1 = arith.constant 0 : i32
    %c0_i32_2 = arith.constant 0 : i32
    return %1, %c0_i32, %c0_i32_0, %c0_i32_1 : i32, i32, i32, i32
  }
  func.func @transform_1(%arg0: i32, %arg1: i32) -> (i32, i32, i32) {
    %c0_i32 = arith.constant 0 : i32
    %c0_i32_0 = arith.constant 0 : i32
    %c0_i32_1 = arith.constant 0 : i32
    %c0_i32_2 = arith.constant 0 : i32
    return %c0_i32, %c0_i32_0, %c0_i32_1 : i32, i32, i32
  }
  func.func @transform_2(%arg0: i32, %arg1: i32) -> (i32, i32) {
    %c0_i32 = arith.constant 0 : i32
    %c0_i32_0 = arith.constant 0 : i32
    %c0_i32_1 = arith.constant 0 : i32
    return %c0_i32, %c0_i32_0 : i32, i32
  }
  func.func @transform_3(%arg0: i32, %arg1: i32) -> (i32, i32, i32) {
    %c0_i32 = arith.constant 0 : i32
    %c0_i32_0 = arith.constant 0 : i32
    %c0_i32_1 = arith.constant 0 : i32
    %c0_i32_2 = arith.constant 0 : i32
    return %c0_i32, %c0_i32_0, %c0_i32_1 : i32, i32, i32
  }
  func.func @transform_4(%arg0: i32, %arg1: i32) -> (i32, i32) {
    %c0_i32 = arith.constant 0 : i32
    %c0_i32_0 = arith.constant 0 : i32
    %c0_i32_1 = arith.constant 0 : i32
    return %c0_i32, %c0_i32_0 : i32, i32
  }
  func.func @transform_5(%arg0: i32, %arg1: i32) -> (i32, i32, i32, i32) {
    %c0_i32 = arith.constant 0 : i32
    %c0_i32_0 = arith.constant 0 : i32
    %c0_i32_1 = arith.constant 0 : i32
    return %arg0, %arg1, %c0_i32, %c0_i32_0 : i32, i32, i32, i32
  }
}

</mosaic_0001>

<bundles_post_ra>
// kernel: tpu_custom_call.1
= control target key start
LH: loop header
LB: loop body
LE: loop exit
PB: predicated region body
PF: predicated region fallthrough
CT: control target
= control target key end

     0   :  { %s3050_s18 = smov 0   ;;  %s3052_s19 = smov 0   ;;  %s3829_s0 = inlined_call_operand.vmem [shape: bf16[8,8,18,4], index: 0, kind: input, shape index: {}]   ;;  %s3830_s1 = inlined_call_operand.vmem [shape: bf16[9,4,8], index: 1, kind: input, shape index: {}]   ;;  %s3831_s2 = inlined_call_operand.vmem [shape: f32[1,8], index: 2, kind: input, shape index: {}]   ;;  %s3832_s3 = inlined_call_operand.vmem [shape: bf16[9,8,8], index: 3, kind: input, shape index: {}]   ;;  %s3833_s4 = inlined_call_operand.vmem [shape: f32[1,8], index: 4, kind: input, shape index: {}]   ;;  %s3834_s5 = inlined_call_operand.vmem [shape: f32[2,16,16,8], index: 5, kind: output, shape index: {}]  }
   0x1   :  { %s3054_s20 = smov 0   ;;  %s3056_s21 = smov 0  }
   0x2   :  { %s3058_s22 = smov 0  }
   0x3 LB: > { %s24_s23 = sadd.s32 1, %s3008_s20  ;;  %s27_s24 = sadd.s32 1, %s3012_s21  ;;  %s3016_s22 = sphi %s3058_s22, %s15_s22   ;;  %s3012_s21 = sphi %s3056_s21, %s3850_s21   ;;  %s3008_s20 = sphi %s3054_s20, %s3849_s20   ;;  %s3004_s19 = sphi %s3052_s19, %s3848_s19   ;;  %s3000_s18 = sphi %s3050_s18, %s3847_s18  }
   0x4   : > { %p25_p0 = scmp.ge.s32.totalorder %s24_s23, 4  ;;  %p2694_p1 = scmp.ge.s32.totalorder %s3016_s22, 1 }
   0x5   : > { %p209_p2 = scmp.lt.s32.totalorder %s3016_s22, 9 }
   0x6   : > { %s3852_s23 = smov (%p25_p0, %s24_s23), 0  ;;  %s3854_s24 = smov (!%p25_p0, %s27_s24), %s3012_s21 }
   0x7   : > { %p210_p3 = pnand %p2694_p1, %p209_p2  ;;  %p29_p4 = scmp.ge.s32.totalorder %s3854_s24, 2 }
   0x8   : > { %s2695_s27 = sshll.u32 (!%p210_p3), %s3004_s19, 2  ;;  %s2697_s6 = sshll.u32 (!%p210_p3), %s3000_s18, 2 }
   0x9   : > { %s3856_s24 = smov (%p29_p4, %s3854_s24), 0  ;;  %213 = sbr.rel (%p210_p3) target bundleno = 821 (0x335), region = 40 }
   0xa   : > { %s245_s28 = sadd.s32 (!%p210_p3), %s3000_s18, %s2695_s27  ;;  %p254_p6 = scmp.lt.s32.totalorder (!%p210_p3), %s3004_s19, 1 }
   0xb   : > { %p246_p5 = scmp.lt.s32.totalorder (!%p210_p3), %s245_s28, 7  ;;  %p256_p7 = scmp.lt.s32.totalorder (!%p210_p3), %s2697_s6, 15 }
   0xc   : > { %p2803_p8 = scmp.ne.s32.totalorder (!%p210_p3), %s3000_s18, 0 }
   0xe   : > { %v289_v0 = vld [vmem:[%s3830_s1] sm:$0x3]  ;;  %vm476_vm0 = vcmask 1041408   ;;  %v2744_v2 = vld [vmem:[%s3830_s1 + $0x4] sm:$0x3]  ;;  %s3858_s28 = smov (!%p246_p5, %s245_s28), 7 }
   0xf   : > { %v568_v1 = vsel %vm476_vm0, %v289_v0, 0  ;;  %v699_v3 = vsel %vm476_vm0, %v2744_v2, 0  ;;  %v2701_v4 = vld [vmem:[%s3830_s1 + $0x2] sm:$0x3]  ;;  %v2762_v6 = vld [vmem:[%s3830_s1 + $0x8] sm:$0x3] }
  0x10   : > { %2931 = vmatpush.bf16.msra.mxu3 %v568_v1  ;;  %577 = vmatpush.bf16.msra.mxu1 %v568_v1  ;;  %v478_v5 = vsel %vm476_vm0, %v2701_v4, 0  ;;  %vm615_vm1 = vcmask 1042432   ;;  %vm616_vm2 = vcmask 1046532   ;;  %s3860_s19 = smov (!%p254_p6, %s3004_s19), 1  ;;  %v849_v7 = vsel %vm476_vm0, %v2762_v6, 0  ;;  %s2933_s11 = smul.u32 96, %s3858_s28 }
  0x11   : > { %708 = vmatpush.bf16.msra.mxu2 %v699_v3  ;;  %487 = vmatpush.bf16.msra.mxu0 %v478_v5  ;;  %vm457_vm3 = vcmask 31744   ;;  %s3862_s6 = smov (!%p256_p7, %s2697_s6), 15  ;;  %v2751_v8 = vld [vmem:[%s3830_s1 + $0x6] sm:$0x3]  ;;  %vm3113_vm4 = vmor %vm615_vm1, %vm616_vm2  ;;  %s2699_s17 = sshll.u32 %s3860_s19, 5  ;;  %vm1379_vm9 = vcmask 60416  }
  0x12   : > { %s3111_s16 = scalar_lea.vmem %s3829_s0, %s2933_s11  ;;  %vm290_vm5 = vsmask.f32 3328  ;;  %vm291_vm6 = vsmask.f32 7440  ;;  %v763_v10 = vsel %vm476_vm0, %v2751_v8, 0  ;;  %s2698_s25 = sshll.u32 %s3862_s6, 1 }
  0x13   : > { %v3119_v11 = vld [vmem:[%s3111_s16 + $0x3c] sm:$0xff]  ;;  %v266_v13 = vld [vmem:[%s3111_s16 + $0x4] sm:$0xf]  ;;  %v267_v14 = vld [vmem:[%s3111_s16 + $0x8] sm:$0x1]  ;;  %s260_s26 = sadd.s32 %s2699_s17, %s2698_s25  ;;  %vm1387_vm14 = vcmask 57344  }
  0x14   : > { %2932 = vmatpush.bf16.msrb.mxu3 %v699_v3  ;;  %v265_v12 = vld [vmem:[%s3111_s16] sm:$0xf]  ;;  %v620_v16 = vrot.slane %v266_v13, 5  ;;  %v623_v19 = vrot.slane %v267_v14, 5  ;;  %s2700_s19 = sshll.u32 %s260_s26, 3  ;;  %v303_v20 = vshll.u32 %v266_v13, 16  ;;  %vm3150_vm7 = vmor %vm290_vm5, %vm291_vm6 }
  0x15   : > { %858 = vmatpush.bf16.msrb.mxu0 %v849_v7  ;;  %v2738_v15 = vrot.slane %v265_v12, 9  ;;  %v294_v17 = vshrl.u32 %v265_v12, 16  ;;  %v297_v18 = vshll.u32 %v265_v12, 16  ;;  %2737 = vmatmul.msk.bf16.vlgmr.msra.gmra.mxu3 %vm457_vm3, %v3119_v11  ;;  %v307_v21 = vshrl.u32 %v266_v13, 16  ;;  %v2911_v23 = vld [vmem:[%s3111_s16] sm:$0xff]  ;;  %s3132_s29 = scalar_lea.vmem %s3834_s5, %s2700_s19 }
  0x16   : > { %v313_v22 = vshll.u32 %v267_v14, 16  ;;  %v622_v25 = vrot.slane %v620_v16, 4  ;;  %v3135_v28 = vld [vmem:[%s3111_s16 + $0x3c] sm:$0xf]  ;;  %v305_v30 = vrot.slane %v303_v20, 5  ;;  %2732 = vmatmul.msk.bf16.vlgmr.msra.gmra.mxu1 %vm457_vm3, %v2911_v23 }
  0x17   : > { %v621_v24 = vsel %vm3113_vm4, %v2738_v15, %v620_v16  ;;  %v296_v26 = vrot.slane %v294_v17, 4  ;;  %v299_v27 = vrot.slane %v297_v18, 5  ;;  %v309_v31 = vrot.slane %v307_v21, 4  ;;  %v3139_v32 = vld [vmem:[%s3111_s16 + $0x40] sm:$0xf]  ;;  %v2912_v16 = vld [vmem:[%s3111_s16 + $0xc] sm:$0xff] }
  0x18   : > { %772 = vmatpush.bf16.msra.mxu3 %v763_v10  ;;  %v662_v29 = vunpack.c.l.b16 %v621_v24  ;;  %v624_v33 = vsel %vm3113_vm4, %v622_v25, %v623_v19  ;;  %v3144_v35 = vld [vmem:[%s3111_s16 + $0x44] sm:$0x1]  ;;  %v2743_v36 = vrot.slane %v3135_v28, 9  ;;  %v655_v37 = vrot.slane %v3139_v32, 5  ;;  %v269_v43 = vld [vmem:[%s3111_s16 + $0x10] sm:$0xf] }
  0x19   : > { %v300_v34 = vor.u32 %v299_v27, %v296_v26  ;;  %v663_v38 = vunpack.c.l.b16 %v624_v33  ;;  %v310_v40 = vor.u32 %v309_v31, %v305_v30  ;;  %v315_v41 = vrot.slane %v313_v22, 5  ;;  %v270_v47 = vld [vmem:[%s3111_s16 + $0x14] sm:$0x1]  ;;  %v268_v51 = vld [vmem:[%s3111_s16 + $0xc] sm:$0xf] }
  0x1a   : > { %v658_v42 = vrot.slane %v3144_v35, 5  ;;  %v656_v45 = vsel %vm3113_vm4, %v2743_v36, %v655_v37  ;;  %v657_v46 = vrot.slane %v655_v37, 4  ;;  %v627_v48 = vrot.slane %v269_v43, 5  ;;  %v271_v17 = vld [vmem:[%s3111_s16 + $0x18] sm:$0xf] }
  0x1b   : > { %v301_v44 = vrot.slane %v300_v34, 4  ;;  %v674_v49 = vpack.c.b16 %v663_v38, %v662_v29  ;;  %v311_v50 = vrot.slane %v310_v40, 4  ;;  %v672_v54 = vunpack.c.l.b16 %v656_v45  ;;  %v272_v19 = vld [vmem:[%s3111_s16 + $0x1c] sm:$0xf]  ;;  %v273_v36 = vld [vmem:[%s3111_s16 + $0x20] sm:$0x1] }
  0x1c   : > { %v659_v53 = vsel %vm3113_vm4, %v657_v46, %v658_v42  ;;  %v2739_v55 = vrot.slane %v268_v51, 9  ;;  %v630_v59 = vrot.slane %v270_v47, 5  ;;  %v629_v61 = vrot.slane %v627_v48, 4 }
  0x1d   : > { %v306_v52 = vsel %vm3150_vm7, %v301_v44, %v305_v30  ;;  %2745 = vmatmul.msk.bf16.vlgmr.msra.gmra.mxu2 %vm457_vm3, %v674_v49  ;;  %v316_v56 = vsel %vm3150_vm7, %v311_v50, %v315_v41  ;;  %v673_v58 = vunpack.c.l.b16 %v659_v53  ;;  %v318_v62 = vshrl.u32 %v268_v51, 16  ;;  %v274_v49 = vld [vmem:[%s3111_s16 + $0x24] sm:$0xf] }
  0x1e   : > { %v439_v57 = vunpack.c.l.b16 %v306_v52  ;;  %v440_v60 = vunpack.c.l.b16 %v316_v56  ;;  %v321_v63 = vshll.u32 %v268_v51, 16  ;;  %v327_v0 = vshll.u32 %v269_v43, 16  ;;  %v275_v56 = vld [vmem:[%s3111_s16 + $0x28] sm:$0xf] }
  0x1f   : > { %v331_v1 = vshrl.u32 %v269_v43, 16  ;;  %v320_v3 = vrot.slane %v318_v62, 4  ;;  %v337_v5 = vshll.u32 %v270_v47, 16  ;;  %v3167_v6 = vpack.c.b16 %v673_v58, %v672_v54 }
  0x20   : > { %v451_v2 = vpack.c.b16 %v440_v60, %v439_v57  ;;  %v323_v4 = vrot.slane %v321_v63, 5  ;;  %v329_v7 = vrot.slane %v327_v0, 5  ;;  %v628_v10 = vsel %vm3113_vm4, %v2739_v55, %v627_v48  ;;  %v3199_v55 = vld [vmem:[%s3111_s16 + $0x18] sm:$0xff] }
  0x21   : > { %v333_v8 = vrot.slane %v331_v1, 4  ;;  %v631_v12 = vsel %vm3113_vm4, %v629_v61, %v630_v59  ;;  %v339_v15 = vrot.slane %v337_v5, 5  ;;  %v664_v20 = vunpack.c.l.b16 %v628_v10 }
  0x22   : > { %2702 = vmatmul.msk.bf16.vlgmr.msra.gmra.mxu0 %vm457_vm3, %v451_v2  ;;  %v324_v13 = vor.u32 %v323_v4, %v320_v3  ;;  %v665_v21 = vunpack.c.l.b16 %v631_v12  ;;  %v342_v23 = vshrl.u32 %v271_v17, 16  ;;  %v345_v24 = vshll.u32 %v271_v17, 16 }
  0x23   : > { %v334_v14 = vor.u32 %v333_v8, %v329_v7  ;;  %v351_v27 = vshll.u32 %v272_v19, 16  ;;  %v355_v29 = vshrl.u32 %v272_v19, 16  ;;  %v634_v34 = vrot.slane %v272_v19, 5  ;;  %v276_v8 = vld [vmem:[%s3111_s16 + $0x2c] sm:$0x1] }
  0x24   : > { %v325_v18 = vrot.slane %v324_v13, 4  ;;  %v3184_v30 = vpack.c.b16 %v665_v21, %v664_v20  ;;  %v344_v37 = vrot.slane %v342_v23, 4  ;;  %v347_v38 = vrot.slane %v345_v24, 5  ;;  %v277_v23 = vld [vmem:[%s3111_s16 + $0x30] sm:$0xf] }
  0x25   : > { %2750 = vmatmul.msk.bf16.vlgmr.msrb.gmra.mxu3 %vm457_vm3, %v3167_v6  ;;  %v335_v22 = vrot.slane %v334_v14, 4  ;;  %v353_v40 = vrot.slane %v351_v27, 5  ;;  %v357_v41 = vrot.slane %v355_v29, 4  ;;  %v2740_v43 = vrot.slane %v271_v17, 9  ;;  %v3224_v27 = vld [vmem:[%s3111_s16 + $0x24] sm:$0xff] }
  0x26   : > { %v330_v25 = vsel %vm3150_vm7, %v325_v18, %v329_v7  ;;  %2733 = vmatmul.msk.bf16.gmra.mxu1 %vm457_vm3, %v2912_v16  ;;  %v636_v44 = vrot.slane %v634_v34, 4  ;;  %v637_v45 = vrot.slane %v273_v36, 5  ;;  %v348_v46 = vor.u32 %v347_v38, %v344_v37  ;;  %v278_v29 = vld [vmem:[%s3111_s16 + $0x34] sm:$0xf] }
  0x27   : > { %v340_v26 = vsel %vm3150_vm7, %v335_v22, %v339_v15  ;;  %v441_v31 = vunpack.c.l.b16 %v330_v25  ;;  %v358_v47 = vor.u32 %v357_v41, %v353_v40  ;;  %v361_v48 = vshll.u32 %v273_v36, 16 }
  0x28   : > { %v442_v33 = vunpack.c.l.b16 %v340_v26  ;;  %v635_v50 = vsel %vm3113_vm4, %v2740_v43, %v634_v34  ;;  %v638_v51 = vsel %vm3113_vm4, %v636_v44, %v637_v45  ;;  %v349_v52 = vrot.slane %v348_v46, 4 }
  0x29   : > { %v359_v53 = vrot.slane %v358_v47, 4  ;;  %v363_v54 = vrot.slane %v361_v48, 5  ;;  %v366_v57 = vshrl.u32 %v274_v49, 16  ;;  %v369_v58 = vshll.u32 %v274_v49, 16 }
  0x2a   : > { %v3189_v42 = vpack.c.b16 %v442_v33, %v441_v31  ;;  %v666_v59 = vunpack.c.l.b16 %v635_v50  ;;  %v667_v60 = vunpack.c.l.b16 %v638_v51  ;;  %v375_v61 = vshll.u32 %v275_v56, 16 }
  0x2b   : > { %v379_v62 = vshrl.u32 %v275_v56, 16  ;;  %v354_v63 = vsel %vm3150_vm7, %v349_v52, %v353_v40  ;;  %v364_v0 = vsel %vm3150_vm7, %v359_v53, %v363_v54  ;;  %v368_v1 = vrot.slane %v366_v57, 4 }
  0x2c   : > { %v371_v2 = vrot.slane %v369_v58, 5  ;;  %v3209_v3 = vpack.c.b16 %v667_v60, %v666_v59  ;;  %v641_v4 = vrot.slane %v275_v56, 5  ;;  %v443_v5 = vunpack.c.l.b16 %v354_v63  ;;  %v279_v56 = vld [vmem:[%s3111_s16 + $0x38] sm:$0x1] }
  0x2d   : > { %2746 = vmatmul.msk.bf16.gmra.mxu2 %vm457_vm3, %v3184_v30  ;;  %v444_v7 = vunpack.c.l.b16 %v364_v0  ;;  %v377_v10 = vrot.slane %v375_v61, 5  ;;  %v381_v12 = vrot.slane %v379_v62, 4  ;;  %v2741_v13 = vrot.slane %v274_v49, 9 }
  0x2e   : > { %v372_v14 = vor.u32 %v371_v2, %v368_v1  ;;  %v643_v15 = vrot.slane %v641_v4, 4  ;;  %v385_v19 = vshll.u32 %v276_v8, 16  ;;  %v390_v34 = vshrl.u32 %v277_v23, 16 }
  0x2f   : > { %v3214_v17 = vpack.c.b16 %v444_v7, %v443_v5  ;;  %v382_v18 = vor.u32 %v381_v12, %v377_v10  ;;  %v642_v20 = vsel %vm3113_vm4, %v2741_v13, %v641_v4  ;;  %v393_v36 = vshll.u32 %v277_v23, 16 }
  0x30   : > { %v373_v21 = vrot.slane %v372_v14, 4  ;;  %v387_v25 = vrot.slane %v385_v19, 5  ;;  %v668_v26 = vunpack.c.l.b16 %v642_v20  ;;  %v414_v37 = vshrl.u32 %v3135_v28, 16 }
  0x31   : > { %v383_v24 = vrot.slane %v382_v18, 4  ;;  %v417_v38 = vshll.u32 %v3135_v28, 16  ;;  %v423_v40 = vshll.u32 %v3139_v32, 16  ;;  %v427_v41 = vshrl.u32 %v3139_v32, 16 }
  0x32   : > { %2703 = vmatmul.msk.bf16.gmra.mxu0 %vm457_vm3, %v3189_v42  ;;  %v378_v33 = vsel %vm3150_vm7, %v373_v21, %v377_v10  ;;  %v399_v44 = vshll.u32 %v278_v29, 16  ;;  %v403_v45 = vshrl.u32 %v278_v29, 16  ;;  %v433_v46 = vshll.u32 %v3144_v35, 16  ;;  %v2915_v21 = vld [vmem:[%s3111_s16 + $0x30] sm:$0xff] }
  0x33   : > { %v388_v43 = vsel %vm3150_vm7, %v383_v24, %v387_v25  ;;  %v416_v47 = vrot.slane %v414_v37, 4  ;;  %v419_v48 = vrot.slane %v417_v38, 5  ;;  %v425_v49 = vrot.slane %v423_v40, 5  ;;  %v2788_v24 = vld [vmem:[%s3830_s1 + $0xe] sm:$0x3] }
  0x34   : > { %v429_v50 = vrot.slane %v427_v41, 4  ;;  %v445_v51 = vunpack.c.l.b16 %v378_v33  ;;  %v435_v53 = vrot.slane %v433_v46, 5  ;;  %v446_v54 = vunpack.c.l.b16 %v388_v43  ;;  %v2777_v25 = vld [vmem:[%s3830_s1 + $0xc] sm:$0x3]  ;;  %v2796_v43 = vld [vmem:[%s3830_s1 + $0x10] sm:$0x3] }
  0x35   : > { %2756 = vmatmul.msk.bf16.vlgmr.msra.gmra.mxu3 %vm457_vm3, %v2912_v16  ;;  %v644_v16 = vrot.slane %v276_v8, 5  ;;  %v420_v52 = vor.u32 %v419_v48, %v416_v47  ;;  %v648_v57 = vrot.slane %v278_v29, 5  ;;  %v392_v58 = vrot.slane %v390_v34, 4 }
  0x36   : > { %2734 = vmatmul.msk.bf16.gmra.mxu1 %vm457_vm3, %v3199_v55  ;;  %v430_v32 = vor.u32 %v429_v50, %v425_v49  ;;  %v395_v59 = vrot.slane %v393_v36, 5  ;;  %v401_v60 = vrot.slane %v399_v44, 5  ;;  %v405_v35 = vrot.slane %v403_v45, 4  ;;  %v2917_v45 = vld [vmem:[%s3111_s16 + $0x48] sm:$0xff] }
  0x37   : > { %v645_v22 = vsel %vm3113_vm4, %v643_v15, %v644_v16  ;;  %v421_v61 = vrot.slane %v420_v52, 4  ;;  %v2742_v63 = vrot.slane %v277_v23, 9  ;;  %v651_v0 = vrot.slane %v279_v56, 5 }
  0x38   : > { %v669_v31 = vunpack.c.l.b16 %v645_v22  ;;  %v431_v62 = vrot.slane %v430_v32, 4  ;;  %v3249_v4 = vpack.c.b16 %v446_v54, %v445_v51  ;;  %v650_v5 = vrot.slane %v648_v57, 4 }
  0x39   : > { %v426_v1 = vsel %vm3150_vm7, %v421_v61, %v425_v49  ;;  %v396_v10 = vor.u32 %v395_v59, %v392_v58  ;;  %v406_v12 = vor.u32 %v405_v35, %v401_v60  ;;  %v409_v13 = vshll.u32 %v279_v56, 16  ;;  %v285_v58 = vld [vmem:[%s3111_s16 + $0x50] sm:$0x1] }
  0x3a   : > { %v3240_v28 = vpack.c.b16 %v669_v31, %v668_v26  ;;  %v436_v2 = vsel %vm3150_vm7, %v431_v62, %v435_v53  ;;  %v449_v7 = vunpack.c.l.b16 %v426_v1  ;;  %v649_v15 = vsel %vm3113_vm4, %v2742_v63, %v648_v57  ;;  %v2770_v26 = vld [vmem:[%s3830_s1 + $0xa] sm:$0x3]  ;;  %v284_v53 = vld [vmem:[%s3111_s16 + $0x4c] sm:$0xf] }
  0x3b   : > { %v450_v8 = vunpack.c.l.b16 %v436_v2  ;;  %v652_v16 = vsel %vm3113_vm4, %v650_v5, %v651_v0  ;;  %v397_v18 = vrot.slane %v396_v10, 4  ;;  %v407_v19 = vrot.slane %v406_v12, 4  ;;  %v283_v57 = vld [vmem:[%s3111_s16 + $0x48] sm:$0xf] }
  0x3c   : > { %v411_v20 = vrot.slane %v409_v13, 5  ;;  %v670_v22 = vunpack.c.l.b16 %v649_v15  ;;  %v671_v23 = vunpack.c.l.b16 %v652_v16  ;;  %v1069_v29 = vsel %vm476_vm0, %v2788_v24, 0 }
  0x3d   : > { %2747 = vmatmul.msk.bf16.gmra.mxu2 %vm457_vm3, %v3209_v3  ;;  %v3251_v14 = vpack.c.b16 %v450_v8, %v449_v7  ;;  %v983_v31 = vsel %vm476_vm0, %v2777_v25, 0  ;;  %v919_v33 = vsel %vm476_vm0, %v2770_v26, 0  ;;  %v402_v34 = vsel %vm3150_vm7, %v397_v18, %v401_v60  ;;  %1078 = vmatpush.bf16.msrb.mxu3 %v1069_v29 }
  0x3e   : > { %v412_v36 = vsel %vm3150_vm7, %v407_v19, %v411_v20  ;;  %992 = vmatpush.bf16.msrb.mxu2 %v983_v31  ;;  %928 = vmatpush.bf16.msrb.mxu1 %v919_v33  ;;  %v3279_v37 = vpack.c.b16 %v671_v23, %v670_v22  ;;  %v447_v38 = vunpack.c.l.b16 %v402_v34  ;;  %v1139_v44 = vsel %vm476_vm0, %v2796_v43, 0  ;;  %v2918_v23 = vld [vmem:[%s3111_s16 + $0x54] sm:$0xff] }
  0x3f   : > { %v448_v40 = vunpack.c.l.b16 %v412_v36  ;;  %1148 = vmatpush.bf16.msra.mxu0 %v1139_v44  ;;  %v905_v54 = vrot.slane %v284_v53, 5  ;;  %v2769_v59 = vrot.slane %v283_v57, 9  ;;  %v908_v35 = vrot.slane %v285_v58, 5 }
  0x40   : > { %v817_v12 = vshrl.u32 %v283_v57, 16  ;;  %v820_v13 = vshll.u32 %v283_v57, 16  ;;  %v826_v15 = vshll.u32 %v284_v53, 16  ;;  %v830_v16 = vshrl.u32 %v284_v53, 16 }
  0x41   : > { %v455_v41 = vpack.c.b16 %v448_v40, %v447_v38  ;;  %v907_v60 = vrot.slane %v905_v54, 4  ;;  %v906_v62 = vsel %vm3113_vm4, %v2769_v59, %v905_v54  ;;  %v836_v38 = vshll.u32 %v285_v58, 16 }
  0x42   : > { %2704 = vmatmul.msk.bf16.gmra.mxu0 %vm457_vm3, %v3214_v17  ;;  %v819_v24 = vrot.slane %v817_v12, 4  ;;  %v822_v26 = vrot.slane %v820_v13, 5  ;;  %v828_v29 = vrot.slane %v826_v15, 5  ;;  %v832_v31 = vrot.slane %v830_v16, 4 }
  0x43   : > { %v909_v2 = vsel %vm3113_vm4, %v907_v60, %v908_v35  ;;  %vm1380_vm10 = vsmask.f32 7938  ;;  %vm1256_vm13 = vsmask.f32 256  ;;  %vm1257_vm15 = vsmask.f32 4368 }
  0x44   : > { %v913_v5 = vunpack.c.l.b16 %v909_v2  ;;  %v823_v34 = vor.u32 %v822_v26, %v819_v24  ;;  %v833_v36 = vor.u32 %v832_v31, %v828_v29  ;;  %vm3436_vm11 = vmand %vm1379_vm9, %vm1380_vm10 }
  0x45   : > { %2757 = vmatmul.msk.bf16.gmra.mxu3 %vm457_vm3, %v3199_v55  ;;  %vm3445_vm0 = vmand %vm1387_vm14, %vm1256_vm13 }
  0x46   : > { %2735 = vmatmul.msk.bf16.gmra.mxu1 %vm457_vm3, %v3224_v27  ;;  %vm3449_vm1 = vmor %vm1256_vm13, %vm1257_vm15 }
  0x47   : > { %vm3464_vm5 = vmand %vm1387_vm14, %vm1380_vm10 }
  0x4d   : > { %2748 = vmatmul.msk.bf16.gmra.mxu2 %vm457_vm3, %v3240_v28 }
  0x52   : > { %2705 = vmatmul.msk.bf16.gmra.mxu0 %vm457_vm3, %v3249_v4 }
  0x55   : > { %2758 = vmatmul.msk.bf16.gmra.mxu3 %vm457_vm3, %v3224_v27 }
  0x56   : > { %2736 = vmatmul.msk.bf16.gmra.mxu1 %vm457_vm3, %v2915_v21 }
  0x5d   : > { %2749 = vmatmul.msk.bf16.gmra.mxu2 %vm457_vm3, %v3279_v37 }
  0x62   : > { %2706 = vmatmul.msk.bf16.gmra.mxu0 %vm457_vm3, %v455_v41 }
  0x65   : > { %2759 = vmatmul.msk.bf16.gmra.mxu3 %vm457_vm3, %v2915_v21 }
  0x66   : > { %2771 = vmatmul.msk.bf16.vlgmr.msrb.gmra.mxu1 %vm457_vm3, %v3184_v30 }
  0x6d   : > { %2782 = vmatmul.msk.bf16.vlgmr.msrb.gmra.mxu2 %vm457_vm3, %v3199_v55 }
  0x72   : > { %2707 = vmatmul.msk.bf16.gmra.mxu0 %vm457_vm3, %v3251_v14 }
  0x75   : > { %2760 = vmatmul.msk.bf16.gmra.mxu3 %vm457_vm3, %v3119_v11 }
  0x76   : > { %2772 = vmatmul.msk.bf16.gmra.mxu1 %vm457_vm3, %v3209_v3 }
  0x7d   : > { %2783 = vmatmul.msk.bf16.gmra.mxu2 %vm457_vm3, %v3224_v27 }
  0x82   : > { %2763 = vmatmul.msk.bf16.vlgmr.msrb.gmra.mxu0 %vm457_vm3, %v3189_v42 }
  0x85   : > { %2761 = vmatmul.msk.bf16.gmra.mxu3 %vm457_vm3, %v2917_v45 }
  0x86   : > { %2773 = vmatmul.msk.bf16.gmra.mxu1 %vm457_vm3, %v3240_v28 }
  0x8d   : > { %2784 = vmatmul.msk.bf16.gmra.mxu2 %vm457_vm3, %v2915_v21 }
  0x92   : > { %2764 = vmatmul.msk.bf16.gmra.mxu0 %vm457_vm3, %v3214_v17 }
  0x93   : > { %v579_v30 = vpop.f32.mrf.mxu1 }
  0x95   : > { %2789 = vmatmul.msk.bf16.vlgmr.msrb.gmra.mxu3 %vm457_vm3, %v3214_v17 }
  0x96   : > { %2774 = vmatmul.msk.bf16.gmra.mxu1 %vm457_vm3, %v3279_v37 }
  0x98   : > { %v3314_v55 = vpop.f32.mrf.mxu3 }
  0x9b   : > { %v581_v42 = vpop.f32.mrf.mxu1 }
  0x9d   : > { %2785 = vmatmul.msk.bf16.gmra.mxu2 %vm457_vm3, %v3119_v11 }
  0x9f   : > { %v489_v27 = vpop.f32.mrf.mxu0 }
  0xa0   : > { %v580_v46 = vadd.f32 %v579_v30, %v489_v27  ;;  %v710_v47 = vpop.f32.mrf.mxu2  ;;  %v3318_v48 = vpop.f32.mrf.mxu3  ;;  %v834_v27 = vrot.slane %v833_v36, 4 }
  0xa2   : > { %v740_v49 = vadd.f32 %v710_v47, %v580_v46  ;;  %2765 = vmatmul.msk.bf16.gmra.mxu0 %vm457_vm3, %v3249_v4  ;;  %v838_v46 = vrot.slane %v836_v38, 5 }
  0xa3   : > { %v584_v17 = vpop.f32.mrf.mxu1 }
  0xa5   : > { %2790 = vmatmul.msk.bf16.gmra.mxu3 %vm457_vm3, %v3249_v4  ;;  %v912_v4 = vunpack.c.l.b16 %v906_v62 }
  0xa6   : > { %2775 = vmatmul.msk.bf16.gmra.mxu1 %vm457_vm3, %v3167_v6 }
  0xa7   : > { %v491_v50 = vpop.f32.mrf.mxu0  ;;  %v3339_v8 = vpack.c.b16 %v913_v5, %v912_v4 }
  0xa8   : > { %v582_v11 = vadd.f32 %v581_v42, %v491_v50  ;;  %v712_v51 = vpop.f32.mrf.mxu2  ;;  %v3326_v52 = vpop.f32.mrf.mxu3  ;;  %v824_v42 = vrot.slane %v823_v34, 4 }
  0xaa   : > { %v741_v32 = vadd.f32 %v712_v51, %v582_v11  ;;  %v829_v47 = vsel %vm3150_vm7, %v824_v42, %v828_v29  ;;  %v3362_v51 = vld [vmem:[%s3111_s16 + $0x58] sm:$0xf] }
  0xab   : > { %v586_v56 = vpop.f32.mrf.mxu1  ;;  %v842_v57 = vunpack.c.l.b16 %v829_v47  ;;  %v1046_v35 = vshll.u32 %v3362_v51, 16 }
  0xad   : > { %2786 = vmatmul.msk.bf16.gmra.mxu2 %vm457_vm3, %v2917_v45  ;;  %v1048_v2 = vrot.slane %v1046_v35, 5 }
  0xaf   : > { %v494_v61 = vpop.f32.mrf.mxu0 }
  0xb0   : > { %v585_v63 = vadd.f32 %v584_v17, %v494_v61  ;;  %v715_v0 = vpop.f32.mrf.mxu2  ;;  %v3334_v1 = vpop.f32.mrf.mxu3  ;;  %v3359_v17 = vld [vmem:[%s3111_s16 + $0x54] sm:$0xf]  ;;  %v1050_v61 = vshrl.u32 %v3362_v51, 16 }
  0xb1   : > { %v1037_v58 = vshrl.u32 %v3359_v17, 16  ;;  %v1040_v60 = vshll.u32 %v3359_v17, 16 }
  0xb2   : > { %v742_v7 = vadd.f32 %v715_v0, %v585_v63  ;;  %2766 = vmatmul.msk.bf16.gmra.mxu0 %vm457_vm3, %v455_v41  ;;  %v1052_v4 = vrot.slane %v1050_v61, 4 }
  0xb3   : > { %v589_v10 = vpop.f32.mrf.mxu1  ;;  %v1039_v63 = vrot.slane %v1037_v58, 4  ;;  %v1042_v0 = vrot.slane %v1040_v60, 5 }
  0xb5   : > { %2791 = vmatmul.msk.bf16.gmra.mxu3 %vm457_vm3, %v455_v41 }
  0xb6   : > { %2776 = vmatmul.msk.bf16.gmra.mxu1 %vm457_vm3, %v3339_v8 }
  0xb7   : > { %v496_v18 = vpop.f32.mrf.mxu0 }
  0xb8   : > { %v587_v19 = vadd.f32 %v586_v56, %v496_v18  ;;  %v717_v20 = vpop.f32.mrf.mxu2  ;;  %v774_v21 = vpop.f32.mrf.mxu3 }
  0xb9   : > { %v3344_v22 = vadd.f32 %v774_v21, %v740_v49  ;;  %v839_v49 = vsel %vm3150_vm7, %v834_v27, %v838_v46 }
  0xba   : > { %v743_v25 = vadd.f32 %v717_v20, %v587_v19  ;;  %v1043_v19 = vor.u32 %v1042_v0, %v1039_v63  ;;  %v1053_v20 = vor.u32 %v1052_v4, %v1048_v2 }
  0xbb   : > { %v591_v33 = vpop.f32.mrf.mxu1 }
  0xbc   : > { %v1054_v24 = vrot.slane %v1053_v20, 4 }
  0xbd   : > { %2787 = vmatmul.msk.bf16.gmra.mxu2 %vm457_vm3, %v2918_v23  ;;  %v1044_v23 = vrot.slane %v1043_v19, 4 }
  0xbf   : > { %v499_v40 = vpop.f32.mrf.mxu0  ;;  %v1049_v38 = vsel %vm3150_vm7, %v1044_v23, %v1048_v2 }
  0xc0   : > { %v590_v41 = vadd.f32 %v589_v10, %v499_v40  ;;  %v720_v43 = vpop.f32.mrf.mxu2  ;;  %v776_v44 = vpop.f32.mrf.mxu3  ;;  %v3371_v10 = vld [vmem:[%s3111_s16 + $0x5c] sm:$0x1] }
  0xc1   : > { %v3348_v45 = vadd.f32 %v776_v44, %v741_v32  ;;  %v1056_v21 = vshll.u32 %v3371_v10, 16 }
  0xc2   : > { %v744_v30 = vadd.f32 %v720_v43, %v590_v41  ;;  %2767 = vmatmul.msk.bf16.gmra.mxu0 %vm457_vm3, %v3251_v14  ;;  %v1062_v43 = vunpack.c.l.b16 %v1049_v38 }
  0xc3   : > { %v594_v11 = vpop.f32.mrf.mxu1  ;;  %v1058_v26 = vrot.slane %v1056_v21, 5 }
  0xc5   : > { %2792 = vmatmul.msk.bf16.gmra.mxu3 %vm457_vm3, %v3251_v14  ;;  %v843_v14 = vunpack.c.l.b16 %v839_v49  ;;  %v1059_v40 = vsel %vm3150_vm7, %v1054_v24, %v1058_v26 }
  0xc6   : > { %v1063_v44 = vunpack.c.l.b16 %v1059_v40 }
  0xc7   : > { %v501_v50 = vpop.f32.mrf.mxu0  ;;  %v844_v62 = vpack.c.b16 %v843_v14, %v842_v57 }
  0xc8   : > { %v592_v32 = vadd.f32 %v591_v33, %v501_v50  ;;  %v722_v53 = vpop.f32.mrf.mxu2  ;;  %v779_v54 = vpop.f32.mrf.mxu3  ;;  %v1064_v50 = vpack.c.b16 %v1063_v44, %v1062_v43 }
  0xc9   : > { %v3364_v56 = vadd.f32 %v779_v54, %v742_v7 }
  0xca   : > { %v745_v59 = vadd.f32 %v722_v53, %v592_v32 }
  0xcb   : > { %v596_v16 = vpop.f32.mrf.mxu1 }
  0xcf   : > { %v504_v5 = vpop.f32.mrf.mxu0 }
  0xd0   : > { %v595_v7 = vadd.f32 %v594_v11, %v504_v5  ;;  %v725_v12 = vpop.f32.mrf.mxu2  ;;  %v781_v13 = vpop.f32.mrf.mxu3 }
  0xd1   : > { %v3373_v15 = vadd.f32 %v781_v13, %v743_v25 }
  0xd2   : > { %v746_v18 = vadd.f32 %v725_v12, %v595_v7  ;;  %2768 = vmatmul.msk.bf16.gmra.mxu0 %vm457_vm3, %v844_v62 }
  0xd3   : > { %v599_v41 = vpop.f32.mrf.mxu1 }
  0xd5   : > { %2793 = vmatmul.msk.bf16.gmra.mxu3 %vm457_vm3, %v844_v62 }
  0xd7   : > { %v506_v29 = vpop.f32.mrf.mxu0 }
  0xd8   : > { %v597_v31 = vadd.f32 %v596_v16, %v506_v29  ;;  %v727_v33 = vpop.f32.mrf.mxu2  ;;  %v784_v34 = vpop.f32.mrf.mxu3 }
  0xd9   : > { %v808_v36 = vadd.f32 %v784_v34, %v744_v30 }
  0xda   : > { %v747_v25 = vadd.f32 %v727_v33, %v597_v31 }
  0xdb   : > { %v601_v30 = vpop.f32.mrf.mxu1 }
  0xdf   : > { %v509_v42 = vpop.f32.mrf.mxu0 }
  0xe0   : > { %v600_v27 = vadd.f32 %v599_v41, %v509_v42  ;;  %v730_v46 = vpop.f32.mrf.mxu2  ;;  %v786_v47 = vpop.f32.mrf.mxu3 }
  0xe1   : > { %v809_v49 = vadd.f32 %v786_v47, %v745_v59 }
  0xe2   : > { %v748_v11 = vadd.f32 %v730_v46, %v600_v27  ;;  %2797 = vmatmul.msk.bf16.vlgmr.msra.gmra.mxu0 %vm457_vm3, %v3209_v3 }
  0xe5   : > { %2794 = vmatmul.msk.bf16.gmra.mxu3 %vm457_vm3, %v1064_v50 }
  0xe7   : > { %v511_v32 = vpop.f32.mrf.mxu0 }
  0xe8   : > { %v602_v53 = vadd.f32 %v601_v30, %v511_v32  ;;  %v732_v54 = vpop.f32.mrf.mxu2  ;;  %v789_v57 = vpop.f32.mrf.mxu3 }
  0xe9   : > { %v810_v14 = vadd.f32 %v789_v57, %v746_v18 }
  0xea   : > { %v749_v58 = vadd.f32 %v732_v54, %v602_v53 }
  0xef   : > { %v514_v60 = vpop.f32.mrf.mxu0 }
  0xf0   : > { %v791_v35 = vpop.f32.mrf.mxu3  ;;  %v605_v5 = vadd.f32 %v3314_v55, %v514_v60  ;;  %v994_v40 = vpop.f32.mrf.mxu2  ;;  %v3430_v60 = vld [vmem:[%s3831_s2] ss:$0 sm:$0xff] }
  0xf1   : > { %v811_v61 = vadd.f32 %v791_v35, %v747_v25 }
  0xf2   : > { %2798 = vmatmul.msk.bf16.gmra.mxu0 %vm457_vm3, %v3240_v28  ;;  %v750_v12 = vadd.f32 %v3326_v52, %v605_v5 }
  0xf7   : > { %v516_v59 = vpop.f32.mrf.mxu0 }
  0xf8   : > { %v794_v62 = vpop.f32.mrf.mxu3  ;;  %v607_v18 = vadd.f32 %v3318_v48, %v516_v59  ;;  %v2795_v48 = vrot.slane %v3359_v17, 9  ;;  %v996_v27 = vpop.f32.mrf.mxu2 }
  0xf9   : > { %v812_v63 = vadd.f32 %v794_v62, %v748_v11 }
  0xfa   : > { %v751_v20 = vadd.f32 %v3334_v1, %v607_v18 }
  0xff   : > { %v860_v0 = vpop.f32.mrf.mxu0 }
 0x100   : > { %v890_v3 = vadd.f32 %v860_v0, %v3344_v22  ;;  %v796_v2 = vpop.f32.mrf.mxu3  ;;  %v999_v11 = vpop.f32.mrf.mxu2 }
 0x101   : > { %v813_v4 = vadd.f32 %v796_v2, %v749_v58 }
 0x102   : > { %2799 = vmatmul.msk.bf16.gmra.mxu0 %vm457_vm3, %v3279_v37 }
 0x107   : > { %v862_v7 = vpop.f32.mrf.mxu0 }
 0x108   : > { %v891_v13 = vadd.f32 %v862_v7, %v3348_v45  ;;  %v799_v16 = vpop.f32.mrf.mxu3  ;;  %v1125_v45 = vrot.slane %v3362_v51, 5  ;;  %v1001_v62 = vpop.f32.mrf.mxu2 }
 0x109   : > { %v814_v28 = vadd.f32 %v799_v16, %v750_v12 }
 0x10a   : > { %v1127_v1 = vrot.slane %v1125_v45, 4 }
 0x10f   : > { %v865_v19 = vpop.f32.mrf.mxu0 }
 0x110   : > { %v892_v22 = vadd.f32 %v865_v19, %v3364_v56  ;;  %v801_v21 = vpop.f32.mrf.mxu3  ;;  %v1128_v56 = vrot.slane %v3371_v10, 5  ;;  %v930_v10 = vpop.f32.mrf.mxu1 }
 0x111   : > { %v815_v23 = vadd.f32 %v801_v21, %v751_v20  ;;  %v960_v32 = vadd.f32 %v930_v10, %v890_v3  ;;  %v1004_v20 = vpop.f32.mrf.mxu2 }
 0x112   : > { %2800 = vmatmul.msk.bf16.gmra.mxu0 %vm457_vm3, %v3167_v6  ;;  %v1126_v6 = vsel %vm3113_vm4, %v2795_v48, %v1125_v45  ;;  %v1382_v45 = vld [vmem:[#allocation2] sm:$0xf] }
 0x113   : > { %v1132_v51 = vunpack.c.l.b16 %v1126_v6  ;;  %v1024_v57 = vadd.f32 %v994_v40, %v960_v32 }
 0x117   : > { %v867_v37 = vpop.f32.mrf.mxu0 }
 0x118   : > { %v3399_v55 = vadd.f32 %v867_v37, %v3373_v15  ;;  %v1129_v15 = vsel %vm3113_vm4, %v1127_v1, %v1128_v56  ;;  %v1080_v41 = vpop.f32.mrf.mxu3  ;;  %v932_v42 = vpop.f32.mrf.mxu1 }
 0x119   : > { %v1133_v31 = vunpack.c.l.b16 %v1129_v15  ;;  %v1110_v58 = vadd.f32 %v1080_v41, %v1024_v57 }
 0x11b   : > { %v1134_v33 = vpack.c.b16 %v1133_v31, %v1132_v51 }
 0x11f   : > { %v870_v52 = vpop.f32.mrf.mxu0 }
 0x120   : > { %v3402_v24 = vadd.f32 %v870_v52, %v808_v36  ;;  %v1082_v46 = vpop.f32.mrf.mxu3  ;;  %v935_v50 = vpop.f32.mrf.mxu1 }
 0x122   : > { %2801 = vmatmul.msk.bf16.gmra.mxu0 %vm457_vm3, %v3339_v8 }
 0x127   : > { %v872_v26 = vpop.f32.mrf.mxu0 }
 0x128   : > { %v3412_v29 = vadd.f32 %v872_v26, %v809_v49  ;;  %v1085_v54 = vpop.f32.mrf.mxu3 }
 0x12f   : > { %v875_v34 = vpop.f32.mrf.mxu0 }
 0x130   : > { %v3414_v36 = vadd.f32 %v875_v34, %v810_v14  ;;  %v937_v14 = vpop.f32.mrf.mxu1  ;;  %v1087_v0 = vpop.f32.mrf.mxu3 }
 0x131   : > { %v963_v31 = vadd.f32 %v937_v14, %v3399_v55  ;;  %v1389_v55 = vld [vmem:[#allocation2 + $0x8] sm:$0x1] }
 0x132   : > { %2802 = vmatmul.msk.bf16.gmra.mxu0 %vm457_vm3, %v1134_v33 }
 0x137   : > { %v877_v8 = vpop.f32.mrf.mxu0 }
 0x138   : > { %v3417_v17 = vadd.f32 %v877_v8, %v811_v61  ;;  %v961_v61 = vadd.f32 %v932_v42, %v891_v13  ;;  %v940_v7 = vpop.f32.mrf.mxu1 }
 0x13a   : > { %v1025_v2 = vadd.f32 %v996_v27, %v961_v61 }
 0x13f   : > { %v880_v25 = vpop.f32.mrf.mxu0 }
 0x140   : > { %v3419_v38 = vadd.f32 %v880_v25, %v812_v63  ;;  %v942_v34 = vpop.f32.mrf.mxu1 }
 0x147   : > { %v882_v43 = vpop.f32.mrf.mxu0 }
 0x148   : > { %v3421_v44 = vadd.f32 %v882_v43, %v813_v4  ;;  %v1111_v4 = vadd.f32 %v1082_v46, %v1025_v2  ;;  %v1027_v43 = vadd.f32 %v1001_v62, %v963_v31  ;;  %v1006_v46 = vpop.f32.mrf.mxu2  ;;  %v1396_v31 = vld [vmem:[#allocation2 + $0x14] sm:$0x1] }
 0x14f   : > { %v885_v47 = vpop.f32.mrf.mxu0 }
 0x150   : > { %v3423_v49 = vadd.f32 %v885_v47, %v814_v28  ;;  %v962_v28 = vadd.f32 %v935_v50, %v892_v22  ;;  %v1090_v22 = vpop.f32.mrf.mxu3 }
 0x152   : > { %v1026_v37 = vadd.f32 %v999_v11, %v962_v28 }
 0x154   : > { %v1112_v56 = vadd.f32 %v1085_v54, %v1026_v37 }
 0x157   : > { %v887_v30 = vpop.f32.mrf.mxu0 }
 0x158   : > { %v3425_v53 = vadd.f32 %v887_v30, %v815_v23  ;;  %v1113_v30 = vadd.f32 %v1087_v0, %v1027_v43  ;;  %v1092_v54 = vpop.f32.mrf.mxu3 }
 0x15f   : > { %v1150_v35 = vpop.f32.mrf.mxu0 }
 0x160   : > { %v1180_v59 = vadd.f32 %v1150_v35, %v1110_v58 }
 0x162   : > { %v1196_v63 = vadd.f32 %v3430_v60, %v1180_v59  ;;  %v964_v59 = vadd.f32 %v940_v7, %v3402_v24 }
 0x164   : > { %vm1208_vm8 = vcmp.ge.f32.partialorder %v1196_v63, 0.0  ;;  %v1220_v3 = vmul.f32 0.2, %v1196_v63 }
 0x166   : > { %v1232_v5 = vsel %vm1208_vm8, %v1196_v63, %v1220_v3  ;;  %v945_v3 = vpop.f32.mrf.mxu1 }
 0x167   : > { %v1244_v12 = vpack.c.bf16 %v1232_v5, %v1232_v5  ;;  %v1152_v16 = vpop.f32.mrf.mxu0 }
 0x168   : > { %v1181_v18 = vadd.f32 %v1152_v16, %v1111_v4  ;;  %v1392_v16 = vld [vmem:[#allocation2 + $0xc] sm:$0xf] }
 0x169   : > { %v1260_v19 = vshrl.u32 %v1244_v12, 16  ;;  %v1263_v23 = vshll.u32 %v1244_v12, 16  ;;  %v1028_v12 = vadd.f32 %v1004_v20, %v964_v59  ;;  %v965_v20 = vadd.f32 %v942_v34, %v3412_v29  ;;  %v1399_v59 = vld [vmem:[#allocation2 + $0x18] sm:$0xf] }
 0x16a   : > { %v1197_v13 = vadd.f32 %v3430_v60, %v1181_v18 }
 0x16b   : > { %v1262_v21 = vrot.slane %v1260_v19, 7  ;;  %v1114_v24 = vadd.f32 %v1090_v22, %v1028_v12  ;;  %v1009_v19 = vpop.f32.mrf.mxu2 }
 0x16c   : > { %vm1209_vm12 = vcmp.ge.f32.partialorder %v1197_v13, 0.0  ;;  %v1221_v48 = vmul.f32 0.2, %v1197_v13 }
 0x16d   : > { %v1265_v1 = vor.u32 %v1263_v23, %v1262_v21  ;;  %v1266_v47 = vrot.slane %v1262_v21, 4 }
 0x16e   : > { %v1233_v26 = vsel %vm1209_vm12, %v1197_v13, %v1221_v48  ;;  %v1095_v48 = vpop.f32.mrf.mxu3 }
 0x16f   : > { %v1383_v6 = vsel %vm3436_vm11, %v1265_v1, %v1382_v45  ;;  %v1245_v15 = vpack.c.bf16 %v1233_v26, %v1233_v26  ;;  %v1155_v51 = vpop.f32.mrf.mxu0 }
 0x170   : > { %1384 = vst [vmem:[#allocation2] sm:$0xf] %v1383_v6  ;;  %v1182_v33 = vadd.f32 %v1155_v51, %v1112_v56  ;;  %v1029_v51 = vadd.f32 %v1006_v46, %v965_v20  ;;  %v966_v46 = vadd.f32 %v945_v3, %v3414_v36  ;;  %v1403_v20 = vld [vmem:[#allocation2 + $0x20] sm:$0x1] }
 0x171   : > { %v1268_v8 = vshrl.u32 %v1245_v15, 16  ;;  %v1271_v41 = vshll.u32 %v1245_v15, 16 }
 0x172   : > { %v1198_v10 = vadd.f32 %v3430_v60, %v1182_v33 }
 0x173   : > { %v1270_v40 = vrot.slane %v1268_v8, 7  ;;  %v947_v8 = vpop.f32.mrf.mxu1 }
 0x174   : > { %vm1210_vm2 = vcmp.ge.f32.partialorder %v1198_v10, 0.0  ;;  %v1222_v27 = vmul.f32 0.2, %v1198_v10  ;;  %v967_v12 = vadd.f32 %v947_v8, %v3417_v17 }
 0x175   : > { %v1273_v50 = vor.u32 %v1271_v41, %v1270_v40  ;;  %v1275_v11 = vrot.slane %v1270_v40, 4  ;;  %v1115_v40 = vadd.f32 %v1092_v54, %v1029_v51 }
 0x176   : > { %v1234_v32 = vsel %vm1210_vm2, %v1198_v10, %v1222_v27 }
 0x177   : > { %v1427_v57 = vld [vmem:[#allocation2] sm:$0x1]  ;;  %v1274_v14 = vsel %vm3449_vm1, %v1266_v47, %v1273_v50  ;;  %v1390_v58 = vsel %vm3445_vm0, %v1275_v11, %v1389_v55  ;;  %v1246_v35 = vpack.c.bf16 %v1234_v32, %v1234_v32  ;;  %v1157_v61 = vpop.f32.mrf.mxu0  ;;  %v1011_v32 = vpop.f32.mrf.mxu2 }
 0x178   : > { %v1428_v62 = vsel %vm3445_vm0, 0, %v1427_v57  ;;  %1386 = vst.msk [vmem:[#allocation2 + $0x4] sm:$0xf] %vm1379_vm9, %v1274_v14  ;;  %v1183_v63 = vadd.f32 %v1157_v61, %v1113_v30  ;;  %v1097_v14 = vpop.f32.mrf.mxu3  ;;  %v1030_v61 = vadd.f32 %v1009_v19, %v966_v46 }
 0x179   : > { %1429 = vst [vmem:[#allocation2] sm:$0x1] %v1428_v62  ;;  %v1277_v0 = vshrl.u32 %v1246_v35, 16  ;;  %v1280_v5 = vshll.u32 %v1246_v35, 16 }
 0x17a   : > { %1391 = vst [vmem:[#allocation2 + $0x8] sm:$0x1] %v1390_v58  ;;  %v1199_v2 = vadd.f32 %v3430_v60, %v1183_v63  ;;  %v1116_v63 = vadd.f32 %v1095_v48, %v1030_v61 }
 0x17b   : > { %v1279_v4 = vrot.slane %v1277_v0, 7 }
 0x17c   : > { %vm1211_vm3 = vcmp.ge.f32.partialorder %v1199_v2, 0.0  ;;  %v1223_v28 = vmul.f32 0.2, %v1199_v2 }
 0x17d   : > { %v1282_v18 = vor.u32 %v1280_v5, %v1279_v4  ;;  %v1283_v10 = vrot.slane %v1279_v4, 4 }
 0x17e   : > { %v1235_v7 = vsel %vm1211_vm3, %v1199_v2, %v1223_v28  ;;  %v950_v2 = vpop.f32.mrf.mxu1 }
 0x17f   : > { %v1393_v21 = vsel %vm3436_vm11, %v1282_v18, %v1392_v16  ;;  %v1247_v23 = vpack.c.bf16 %v1235_v7, %v1235_v7  ;;  %v1160_v37 = vpop.f32.mrf.mxu0  ;;  %v1014_v19 = vpop.f32.mrf.mxu2  ;;  %v968_v8 = vadd.f32 %v950_v2, %v3419_v38 }
 0x180   : > { %1394 = vst [vmem:[#allocation2 + $0xc] sm:$0xf] %v1393_v21  ;;  %v1184_v45 = vadd.f32 %v1160_v37, %v1114_v24  ;;  %v1031_v37 = vadd.f32 %v1011_v32, %v967_v12  ;;  %v1100_v48 = vpop.f32.mrf.mxu3 }
 0x181   : > { %v1446_v1 = vld [vmem:[#allocation2 + $0x8] sm:$0x1]  ;;  %v1285_v22 = vshrl.u32 %v1247_v23, 16  ;;  %v1288_v15 = vshll.u32 %v1247_v23, 16 }
 0x182   : > { %v1447_v56 = vsel %vm3464_vm5, 0, %v1446_v1  ;;  %v1200_v26 = vadd.f32 %v3430_v60, %v1184_v45 }
 0x183   : > { %1448 = vst [vmem:[#allocation2 + $0x8] sm:$0x1] %v1447_v56  ;;  %v1287_v6 = vrot.slane %v1285_v22, 7  ;;  %v1117_v56 = vadd.f32 %v1097_v14, %v1031_v37 }
 0x184   : > { %vm1212_vm6 = vcmp.ge.f32.partialorder %v1200_v26, 0.0  ;;  %v1224_v33 = vmul.f32 0.2, %v1200_v26 }
 0x185   : > { %v1290_v29 = vor.u32 %v1288_v15, %v1287_v6  ;;  %v1292_v34 = vrot.slane %v1287_v6, 4 }
 0x186   : > { %v1236_v41 = vsel %vm1212_vm6, %v1200_v26, %v1224_v33 }
 0x187   : > { %v1430_v43 = vld [vmem:[#allocation2 + $0xc] sm:$0x1]  ;;  %v1291_v55 = vsel %vm3449_vm1, %v1283_v10, %v1290_v29  ;;  %v1397_v27 = vsel %vm3445_vm0, %v1292_v34, %v1396_v31  ;;  %v1248_v47 = vpack.c.bf16 %v1236_v41, %v1236_v41  ;;  %v1162_v50 = vpop.f32.mrf.mxu0  ;;  %v952_v34 = vpop.f32.mrf.mxu1 }
 0x188   : > { %v1431_v11 = vsel %vm3445_vm0, 0, %v1430_v43  ;;  %1395 = vst.msk [vmem:[#allocation2 + $0x10] sm:$0xf] %vm1379_vm9, %v1291_v55  ;;  %v1185_v30 = vadd.f32 %v1162_v50, %v1115_v40  ;;  %v1016_v46 = vpop.f32.mrf.mxu2  ;;  %v1102_v32 = vpop.f32.mrf.mxu3 }
 0x189   : > { %1432 = vst [vmem:[#allocation2 + $0xc] sm:$0x1] %v1431_v11  ;;  %v1294_v54 = vshrl.u32 %v1248_v47, 16  ;;  %v1297_v35 = vshll.u32 %v1248_v47, 16  ;;  %v1406_v47 = vld [vmem:[#allocation2 + $0x24] sm:$0xf] }
 0x18a   : > { %1398 = vst [vmem:[#allocation2 + $0x14] sm:$0x1] %v1397_v27  ;;  %v1201_v57 = vadd.f32 %v3430_v60, %v1185_v30  ;;  %v1032_v27 = vadd.f32 %v1014_v19, %v968_v8 }
 0x18b   : > { %v1296_v58 = vrot.slane %v1294_v54, 7 }
 0x18c   : > { %vm1213_vm8 = vcmp.ge.f32.partialorder %v1201_v57, 0.0  ;;  %v1225_v62 = vmul.f32 0.2, %v1201_v57  ;;  %v1118_v11 = vadd.f32 %v1100_v48, %v1032_v27 }
 0x18d   : > { %v1299_v36 = vor.u32 %v1297_v35, %v1296_v58  ;;  %v1300_v1 = vrot.slane %v1296_v58, 4  ;;  %v969_v58 = vadd.f32 %v952_v34, %v3421_v44 }
 0x18e   : > { %v1237_v0 = vsel %vm1213_vm8, %v1201_v57, %v1225_v62 }
 0x18f   : > { %v1400_v3 = vsel %vm3436_vm11, %v1299_v36, %v1399_v59  ;;  %v1249_v4 = vpack.c.bf16 %v1237_v0, %v1237_v0  ;;  %v1165_v5 = vpop.f32.mrf.mxu0 }
 0x190   : > { %1401 = vst [vmem:[#allocation2 + $0x18] sm:$0xf] %v1400_v3  ;;  %v1186_v16 = vadd.f32 %v1165_v5, %v1116_v63  ;;  %v955_v63 = vpop.f32.mrf.mxu1  ;;  %v1033_v3 = vadd.f32 %v1016_v46, %v969_v58 }
 0x191   : > { %v1449_v28 = vld [vmem:[#allocation2 + $0x14] sm:$0x1]  ;;  %v1302_v18 = vshrl.u32 %v1249_v4, 16  ;;  %v1305_v23 = vshll.u32 %v1249_v4, 16  ;;  %v1410_v4 = vld [vmem:[#allocation2 + $0x2c] sm:$0x1] }
 0x192   : > { %v1450_v24 = vsel %vm3464_vm5, 0, %v1449_v28  ;;  %v1202_v7 = vadd.f32 %v3430_v60, %v1186_v16  ;;  %v1119_v28 = vadd.f32 %v1102_v32, %v1033_v3  ;;  %v1417_v32 = vld [vmem:[#allocation2 + $0x38] sm:$0x1] }
 0x193   : > { %1451 = vst [vmem:[#allocation2 + $0x14] sm:$0x1] %v1450_v24  ;;  %v1304_v21 = vrot.slane %v1302_v18, 7  ;;  %v1019_v24 = vpop.f32.mrf.mxu2 }
 0x194   : > { %vm1214_vm10 = vcmp.ge.f32.partialorder %v1202_v7, 0.0  ;;  %v1226_v45 = vmul.f32 0.2, %v1202_v7 }
 0x195   : > { %v1307_v17 = vor.u32 %v1305_v23, %v1304_v21  ;;  %v1309_v22 = vrot.slane %v1304_v21, 4 }
 0x196   : > { %v1238_v26 = vsel %vm1214_vm10, %v1202_v7, %v1226_v45 }
 0x197   : > { %v1433_v6 = vld [vmem:[#allocation2 + $0x18] sm:$0x1]  ;;  %v1308_v15 = vsel %vm3449_vm1, %v1300_v1, %v1307_v17  ;;  %v1404_v51 = vsel %vm3445_vm0, %v1309_v22, %v1403_v20  ;;  %v1250_v31 = vpack.c.bf16 %v1238_v26, %v1238_v26  ;;  %v1167_v33 = vpop.f32.mrf.mxu0  ;;  %v970_v20 = vadd.f32 %v955_v63, %v3423_v49  ;;  %v1105_v1 = vpop.f32.mrf.mxu3 }
 0x198   : > { %v1434_v10 = vsel %vm3445_vm0, 0, %v1433_v6  ;;  %1402 = vst.msk [vmem:[#allocation2 + $0x1c] sm:$0xf] %vm1379_vm9, %v1308_v15  ;;  %v1187_v29 = vadd.f32 %v1167_v33, %v1117_v56  ;;  %v1413_v15 = vld [vmem:[#allocation2 + $0x30] sm:$0xf] }
 0x199   : > { %1435 = vst [vmem:[#allocation2 + $0x18] sm:$0x1] %v1434_v10  ;;  %v1311_v40 = vshrl.u32 %v1250_v31, 16  ;;  %v1314_v55 = vshll.u32 %v1250_v31, 16  ;;  %v1034_v6 = vadd.f32 %v1019_v24, %v970_v20  ;;  %v957_v31 = vpop.f32.mrf.mxu1  ;;  %v1424_v20 = vld [vmem:[#allocation2 + $0x44] sm:$0x1] }
 0x19a   : > { %1405 = vst [vmem:[#allocation2 + $0x20] sm:$0x1] %v1404_v51  ;;  %v1203_v41 = vadd.f32 %v3430_v60, %v1187_v29 }
 0x19b   : > { %v1313_v43 = vrot.slane %v1311_v40, 7  ;;  %v1120_v33 = vadd.f32 %v1105_v1, %v1034_v6  ;;  %v971_v40 = vadd.f32 %v957_v31, %v3425_v53 }
 0x19c   : > { %vm1215_vm12 = vcmp.ge.f32.partialorder %v1203_v41, 0.0  ;;  %v1227_v50 = vmul.f32 0.2, %v1203_v41 }
 0x19d   : > { %v1316_v38 = vor.u32 %v1314_v55, %v1313_v43  ;;  %v1317_v12 = vrot.slane %v1313_v43, 4  ;;  %v1021_v43 = vpop.f32.mrf.mxu2 }
 0x19e   : > { %v1239_v30 = vsel %vm1215_vm12, %v1203_v41, %v1227_v50 }
 0x19f   : > { %v1407_v54 = vsel %vm3436_vm11, %v1316_v38, %v1406_v47  ;;  %v1251_v57 = vpack.c.bf16 %v1239_v30, %v1239_v30  ;;  %v1170_v14 = vpop.f32.mrf.mxu0  ;;  %v1107_v46 = vpop.f32.mrf.mxu3  ;;  %v1035_v30 = vadd.f32 %v1021_v43, %v971_v40 }
 0x1a0   : > { %1408 = vst [vmem:[#allocation2 + $0x24] sm:$0xf] %v1407_v54  ;;  %v1188_v35 = vadd.f32 %v1170_v14, %v1118_v11 }
 0x1a1   : > { %v1452_v61 = vld [vmem:[#allocation2 + $0x20] sm:$0x1]  ;;  %v1319_v59 = vshrl.u32 %v1251_v57, 16  ;;  %v1322_v2 = vshll.u32 %v1251_v57, 16  ;;  %v1121_v58 = vadd.f32 %v1107_v46, %v1035_v30 }
 0x1a2   : > { %v1453_v62 = vsel %vm3464_vm5, 0, %v1452_v61  ;;  %v1204_v36 = vadd.f32 %v3430_v60, %v1188_v35 }
 0x1a3   : > { %1454 = vst [vmem:[#allocation2 + $0x20] sm:$0x1] %v1453_v62  ;;  %v1321_v0 = vrot.slane %v1319_v59, 7 }
 0x1a4   : > { %vm1216_vm13 = vcmp.ge.f32.partialorder %v1204_v36, 0.0  ;;  %v1228_v5 = vmul.f32 0.2, %v1204_v36 }
 0x1a5   : > { %v1324_v16 = vor.u32 %v1322_v2, %v1321_v0  ;;  %v1326_v44 = vrot.slane %v1321_v0, 4 }
 0x1a6   : > { %v1240_v18 = vsel %vm1216_vm13, %v1204_v36, %v1228_v5 }
 0x1a7   : > { %v1436_v7 = vld [vmem:[#allocation2 + $0x24] sm:$0x1]  ;;  %v1325_v19 = vsel %vm3449_vm1, %v1317_v12, %v1324_v16  ;;  %v1411_v21 = vsel %vm3445_vm0, %v1326_v44, %v1410_v4  ;;  %v1252_v23 = vpack.c.bf16 %v1240_v18, %v1240_v18  ;;  %v1172_v37 = vpop.f32.mrf.mxu0  ;;  %v1420_v16 = vld [vmem:[#allocation2 + $0x3c] sm:$0xf] }
 0x1a8   : > { %v1437_v45 = vsel %vm3445_vm0, 0, %v1436_v7  ;;  %1409 = vst.msk [vmem:[#allocation2 + $0x28] sm:$0xf] %vm1379_vm9, %v1325_v19  ;;  %v1189_v48 = vadd.f32 %v1172_v37, %v1119_v28 }
 0x1a9   : > { %1438 = vst [vmem:[#allocation2 + $0x24] sm:$0x1] %v1437_v45  ;;  %v1328_v17 = vshrl.u32 %v1252_v23, 16  ;;  %v1331_v26 = vshll.u32 %v1252_v23, 16 }
 0x1aa   : > { %1412 = vst [vmem:[#allocation2 + $0x2c] sm:$0x1] %v1411_v21  ;;  %v1205_v22 = vadd.f32 %v3430_v60, %v1189_v48 }
 0x1ab   : > { %v1330_v56 = vrot.slane %v1328_v17, 7 }
 0x1ac   : > { %vm1217_vm15 = vcmp.ge.f32.partialorder %v1205_v22, 0.0  ;;  %v1229_v51 = vmul.f32 0.2, %v1205_v22 }
 0x1ad   : > { %v1333_v49 = vor.u32 %v1331_v26, %v1330_v56  ;;  %v1334_v57 = vrot.slane %v1330_v56, 4 }
 0x1ae   : > { %v1241_v8 = vsel %vm1217_vm15, %v1205_v22, %v1229_v51 }
 0x1af   : > { %v1414_v10 = vsel %vm3436_vm11, %v1333_v49, %v1413_v15  ;;  %v1253_v29 = vpack.c.bf16 %v1241_v8, %v1241_v8  ;;  %v1175_v34 = vpop.f32.mrf.mxu0 }
 0x1b0   : > { %1415 = vst [vmem:[#allocation2 + $0x30] sm:$0xf] %v1414_v10  ;;  %v1190_v41 = vadd.f32 %v1175_v34, %v1120_v33 }
 0x1b1   : > { %v1455_v55 = vld [vmem:[#allocation2 + $0x2c] sm:$0x1]  ;;  %v1336_v27 = vshrl.u32 %v1253_v29, 16  ;;  %v1339_v11 = vshll.u32 %v1253_v29, 16 }
 0x1b2   : > { %v1456_v47 = vsel %vm3464_vm5, 0, %v1455_v55  ;;  %v1206_v50 = vadd.f32 %v3430_v60, %v1190_v41 }
 0x1b3   : > { %1457 = vst [vmem:[#allocation2 + $0x2c] sm:$0x1] %v1456_v47  ;;  %v1338_v38 = vrot.slane %v1336_v27, 7 }
 0x1b4   : > { %vm1218_vm2 = vcmp.ge.f32.partialorder %v1206_v50, 0.0  ;;  %v1230_v54 = vmul.f32 0.2, %v1206_v50 }
 0x1b5   : > { %v1341_v53 = vor.u32 %v1339_v11, %v1338_v38  ;;  %v1343_v14 = vrot.slane %v1338_v38, 4 }
 0x1b6   : > { %v1242_v35 = vsel %vm1218_vm2, %v1206_v50, %v1230_v54 }
 0x1b7   : > { %v1439_v61 = vld [vmem:[#allocation2 + $0x30] sm:$0x1]  ;;  %v1342_v59 = vsel %vm3449_vm1, %v1334_v57, %v1341_v53  ;;  %v1418_v62 = vsel %vm3445_vm0, %v1343_v14, %v1417_v32  ;;  %v1254_v36 = vpack.c.bf16 %v1242_v35, %v1242_v35  ;;  %v1177_v63 = vpop.f32.mrf.mxu0 }
 0x1b8   : > { %v1440_v0 = vsel %vm3445_vm0, 0, %v1439_v61  ;;  %1416 = vst.msk [vmem:[#allocation2 + $0x34] sm:$0xf] %vm1379_vm9, %v1342_v59  ;;  %v1191_v2 = vadd.f32 %v1177_v63, %v1121_v58 }
 0x1b9   : > { %1441 = vst [vmem:[#allocation2 + $0x30] sm:$0x1] %v1440_v0  ;;  %v1345_v3 = vshrl.u32 %v1254_v36, 16  ;;  %v1348_v12 = vshll.u32 %v1254_v36, 16 }
 0x1ba   : > { %1419 = vst [vmem:[#allocation2 + $0x38] sm:$0x1] %v1418_v62  ;;  %v1207_v4 = vadd.f32 %v3430_v60, %v1191_v2 }
 0x1bb   : > { %v1347_v5 = vrot.slane %v1345_v3, 7 }
 0x1bc   : > { %vm1219_vm3 = vcmp.ge.f32.partialorder %v1207_v4, 0.0  ;;  %v1231_v44 = vmul.f32 0.2, %v1207_v4 }
 0x1bd   : > { %v1350_v28 = vor.u32 %v1348_v12, %v1347_v5  ;;  %v1351_v45 = vrot.slane %v1347_v5, 4 }
 0x1be   : > { %v1243_v18 = vsel %vm1219_vm3, %v1207_v4, %v1231_v44 }
 0x1bf   : > { %v1421_v24 = vsel %vm3436_vm11, %v1350_v28, %v1420_v16  ;;  %v1255_v7 = vpack.c.bf16 %v1243_v18, %v1243_v18 }
 0x1c0   : > { %1422 = vst [vmem:[#allocation2 + $0x3c] sm:$0xf] %v1421_v24 }
 0x1c1   : > { %v1458_v19 = vld [vmem:[#allocation2 + $0x38] sm:$0x1]  ;;  %v1353_v21 = vshrl.u32 %v1255_v7, 16  ;;  %v1356_v60 = vshll.u32 %v1255_v7, 16 }
 0x1c2   : > { %v1459_v23 = vsel %vm3464_vm5, 0, %v1458_v19 }
 0x1c3   : > { %1460 = vst [vmem:[#allocation2 + $0x38] sm:$0x1] %v1459_v23  ;;  %v1355_v37 = vrot.slane %v1353_v21, 7 }
 0x1c5   : > { %v1358_v48 = vor.u32 %v1356_v60, %v1355_v37  ;;  %v1360_v1 = vrot.slane %v1355_v37, 4 }
 0x1c7   : > { %v1442_v17 = vld [vmem:[#allocation2 + $0x3c] sm:$0x1]  ;;  %v1359_v22 = vsel %vm3449_vm1, %v1351_v45, %v1358_v48  ;;  %v1425_v52 = vsel %vm3445_vm0, %v1360_v1, %v1424_v20 }
 0x1c8   : > { %v1443_v56 = vsel %vm3445_vm0, 0, %v1442_v17  ;;  %1423 = vst.msk [vmem:[#allocation2 + $0x40] sm:$0xf] %vm1379_vm9, %v1359_v22 }
 0x1c9   : > { %1444 = vst [vmem:[#allocation2 + $0x3c] sm:$0x1] %v1443_v56 }
 0x1ca   : > { %1426 = vst [vmem:[#allocation2 + $0x44] sm:$0x1] %v1425_v52 }
 0x1cf   : > { %1467 = sbr.rel (%p2803_p8) target bundleno = 472 (0x1d8), region = 44 }
 0x1d1   : > { %v1461_v26 = vld [vmem:[#allocation2 + $0x44] sm:$0x1] }
 0x1d2   : > { %v1462_v6 = vsel %vm3464_vm5, 0, %v1461_v26 }
 0x1d3   : > { %1463 = vst [vmem:[#allocation2 + $0x44] sm:$0x1] %v1462_v6 }
 0x1d4   : > { %v3018_v42 = vmov 0  }
 0x1d5   : > { %1468 = vst.msk [vmem:[#allocation2] sm:$0xf] %vm1379_vm9, %v3018_v42 }
 0x1d6   : > { %1469 = vst.msk [vmem:[#allocation2 + $0x4] sm:$0xf] %vm1379_vm9, %v3018_v42 }
 0x1d7   : > { %1471 = vst.msk [vmem:[#allocation2 + $0x8] sm:$0x1] %vm1387_vm14, %v3018_v42 }
 0x1d8 PF: > { %p2804_p9 = scmp.ne.s32.totalorder %s3000_s18, 3 }
 0x1da   : > { %1475 = sbr.rel (%p2804_p9) target bundleno = 483 (0x1e3), region = 48 }
 0x1df   : > { %v3019_v25 = vmov 0  }
 0x1e0   : > { %1477 = vst.msk [vmem:[#allocation2 + $0x3c] sm:$0xf] %vm1379_vm9, %v3019_v25 }
 0x1e1   : > { %1478 = vst.msk [vmem:[#allocation2 + $0x40] sm:$0xf] %vm1379_vm9, %v3019_v25 }
 0x1e2   : > { %1480 = vst.msk [vmem:[#allocation2 + $0x44] sm:$0x1] %vm1387_vm14, %v3019_v25 }
 0x1e3 PF: > { %v1489_v13 = vld [vmem:[%s3832_s3] sm:$0xf]  ;;  %vm1617_vm11 = vcmask 1043456   ;;  %vm1604_vm0 = vcmask 64512   ;;  %v2834_v31 = vld [vmem:[%s3832_s3 + $0x8] sm:$0xf] }
 0x1e4   : > { %v2919_v15 = vld [vmem:[#allocation2] sm:$0xff]  ;;  %v1683_v51 = vsel %vm1617_vm11, %v1489_v13, 0  ;;  %v1781_v33 = vsel %vm1617_vm11, %v2834_v31, 0  ;;  %v1490_v8 = vld [vmem:[#allocation2 + $0x8] sm:$0x1] }
 0x1e5   : > { %v1482_v49 = vld [vmem:[#allocation2 + $0x4] sm:$0xf]  ;;  %1692 = vmatpush.bf16.msra.mxu2 %v1683_v51  ;;  %v1714_v10 = vld [vmem:[#allocation2] sm:$0xe]  ;;  %1790 = vmatpush.bf16.msra.mxu3 %v1781_v33  ;;  %v1731_v40 = vrot.slane %v1490_v8, 5  ;;  %v1514_v58 = vshll.u32 %v1490_v8, 16 }
 0x1e6   : > { %v1728_v29 = vrot.slane %v1482_v49, 5  ;;  %v2830_v34 = vrot.slane %v1714_v10, 9  ;;  %v2860_v41 = vld [vmem:[%s3832_s3 + $0x10] sm:$0xf]  ;;  %v2805_v43 = vld [vmem:[%s3832_s3 + $0x4] sm:$0xf] }
 0x1e7   : > { %v2038_v27 = vsel %vm1617_vm11, %v2860_v41, 0  ;;  %v1619_v47 = vsel %vm1617_vm11, %v2805_v43, 0  ;;  %v1481_v50 = vld [vmem:[#allocation2] sm:$0xf]  ;;  %v1504_v46 = vshll.u32 %v1482_v49, 16  ;;  %v1508_v32 = vshrl.u32 %v1482_v49, 16 }
 0x1e8   : > { %v1730_v55 = vrot.slane %v1728_v29, 4  ;;  %2826 = vmatmul.msk.bf16.vlgmr.msra.gmra.mxu2 %vm1604_vm0, %v2919_v15  ;;  %v1729_v38 = vsel %vm3113_vm4, %v2830_v34, %v1728_v29  ;;  %1628 = vmatpush.bf16.msra.mxu1 %v1619_v47  ;;  %v1495_v11 = vshrl.u32 %v1481_v50, 16  ;;  %v1498_v30 = vshll.u32 %v1481_v50, 16  ;;  %v2839_v54 = vld [vmem:[%s3832_s3 + $0xc] sm:$0xf] }
 0x1e9   : > { %v1756_v53 = vunpack.c.l.b16 %v1729_v38  ;;  %2047 = vmatpush.bf16.msrb.mxu2 %v2038_v27  ;;  %v1506_v14 = vrot.slane %v1504_v46, 5  ;;  %v1484_v35 = vld [vmem:[#allocation2 + $0x10] sm:$0xf]  ;;  %v1510_v36 = vrot.slane %v1508_v32, 4  ;;  %v1715_v63 = vld [vmem:[#allocation2 + $0xc] sm:$0xe] }
 0x1ea   : > { %v1732_v57 = vsel %vm3113_vm4, %v1730_v55, %v1731_v40  ;;  %v1497_v59 = vrot.slane %v1495_v11, 4  ;;  %v1500_v62 = vrot.slane %v1498_v30, 5  ;;  %v1864_v0 = vsel %vm1617_vm11, %v2839_v54, 0  ;;  %v1491_v2 = vld [vmem:[#allocation2 + $0x14] sm:$0x1]  ;;  %v2920_v51 = vld [vmem:[#allocation2 + $0xc] sm:$0xff] }
 0x1eb   : > { %v1757_v61 = vunpack.c.l.b16 %v1732_v57  ;;  %v1735_v3 = vrot.slane %v1484_v35, 5  ;;  %v1483_v4 = vld [vmem:[#allocation2 + $0xc] sm:$0xf]  ;;  %v1511_v16 = vor.u32 %v1510_v36, %v1506_v14  ;;  %v1516_v44 = vrot.slane %v1514_v58, 5  ;;  %v1485_v49 = vld [vmem:[#allocation2 + $0x18] sm:$0xf] }
 0x1ec   : > { %v1501_v12 = vor.u32 %v1500_v62, %v1497_v59  ;;  %1873 = vmatpush.bf16.msrb.mxu1 %v1864_v0  ;;  %v2831_v28 = vrot.slane %v1715_v63, 9  ;;  %v1519_v18 = vshrl.u32 %v1483_v4, 16  ;;  %v1522_v24 = vshll.u32 %v1483_v4, 16  ;;  %v1486_v34 = vld [vmem:[#allocation2 + $0x1c] sm:$0xf] }
 0x1ed   : > { %v1764_v5 = vpack.c.b16 %v1757_v61, %v1756_v53  ;;  %v1512_v19 = vrot.slane %v1511_v16, 4  ;;  %v1738_v21 = vrot.slane %v1491_v2, 5  ;;  %v1528_v23 = vshll.u32 %v1484_v35, 16  ;;  %v1492_v11 = vld [vmem:[#allocation2 + $0x20] sm:$0x1] }
 0x1ee   : > { %v1502_v7 = vrot.slane %v1501_v12, 4  ;;  %v1737_v37 = vrot.slane %v1735_v3, 4  ;;  %v1521_v60 = vrot.slane %v1519_v18, 4  ;;  %v1524_v20 = vrot.slane %v1522_v24, 5  ;;  %v1716_v30 = vld [vmem:[#allocation2 + $0x18] sm:$0xe] }
 0x1ef   : > { %2835 = vmatmul.msk.bf16.vlgmr.msra.gmra.mxu3 %vm1604_vm0, %v1764_v5  ;;  %v1532_v45 = vshrl.u32 %v1484_v35, 16  ;;  %v1517_v1 = vsel %vm3150_vm7, %v1512_v19, %v1516_v44  ;;  %v1530_v17 = vrot.slane %v1528_v23, 5  ;;  %v1538_v6 = vshll.u32 %v1491_v2, 16  ;;  %v1488_v4 = vld [vmem:[#allocation2 + $0x28] sm:$0xf] }
 0x1f0   : > { %v1507_v48 = vsel %vm3150_vm7, %v1502_v7, %v1506_v14  ;;  %v1593_v52 = vunpack.c.l.b16 %v1517_v1  ;;  %v1525_v56 = vor.u32 %v1524_v20, %v1521_v60  ;;  %v1736_v25 = vsel %vm3113_vm4, %v2831_v28, %v1735_v3  ;;  %v2921_v3 = vld [vmem:[#allocation2 + $0x18] sm:$0xff]  ;;  %v1487_v5 = vld [vmem:[#allocation2 + $0x24] sm:$0xf]  ;;  %v2869_v28 = vld [vmem:[%s3832_s3 + $0x14] sm:$0xf] }
 0x1f1   : > { %v1592_v22 = vunpack.c.l.b16 %v1507_v48  ;;  %v1534_v26 = vrot.slane %v1532_v45, 4  ;;  %v1739_v13 = vsel %vm3113_vm4, %v1737_v37, %v1738_v21  ;;  %v1758_v33 = vunpack.c.l.b16 %v1736_v25  ;;  %v1717_v19 = vld [vmem:[#allocation2 + $0x24] sm:$0xe]  ;;  %v2904_v37 = vld [vmem:[%s3832_s3 + $0x20] sm:$0xf] }
 0x1f2   : > { %v1526_v31 = vrot.slane %v1525_v56, 4  ;;  %v1759_v8 = vunpack.c.l.b16 %v1739_v13  ;;  %v1540_v29 = vrot.slane %v1538_v6, 5  ;;  %v1543_v40 = vshrl.u32 %v1485_v49, 16  ;;  %v1493_v45 = vld [vmem:[#allocation2 + $0x2c] sm:$0x1] }
 0x1f3   : > { %v1600_v42 = vpack.c.b16 %v1593_v52, %v1592_v22  ;;  %v1535_v15 = vor.u32 %v1534_v26, %v1530_v17  ;;  %v1546_v43 = vshll.u32 %v1485_v49, 16  ;;  %v1552_v55 = vshll.u32 %v1486_v34, 16  ;;  %v1903_v56 = vld [vmem:[#allocation2 + $0xc] sm:$0xf]  ;;  %v3607_v26 = vld [vmem:[#allocation2 + $0x10] sm:$0xf] }
 0x1f4   : > { %v1531_v41 = vsel %vm3150_vm7, %v1526_v31, %v1530_v17  ;;  %v1556_v27 = vshrl.u32 %v1486_v34, 16  ;;  %v1765_v47 = vpack.c.b16 %v1759_v8, %v1758_v33  ;;  %v1742_v46 = vrot.slane %v1486_v34, 5 }
 0x1f5   : > { %2806 = vmatmul.msk.bf16.vlgmr.msra.gmra.mxu1 %vm1604_vm0, %v1600_v42  ;;  %v1536_v10 = vrot.slane %v1535_v15, 4  ;;  %v1594_v38 = vunpack.c.l.b16 %v1531_v41  ;;  %v1545_v32 = vrot.slane %v1543_v40, 4  ;;  %v1548_v57 = vrot.slane %v1546_v43, 5 }
 0x1f6   : > { %v1554_v53 = vrot.slane %v1552_v55, 5  ;;  %v1558_v14 = vrot.slane %v1556_v27, 4  ;;  %v2832_v58 = vrot.slane %v1716_v30, 9  ;;  %v1744_v35 = vrot.slane %v1742_v46, 4  ;;  %v1905_v30 = vld [vmem:[#allocation2 + $0x14] sm:$0x1] }
 0x1f7   : > { %v1541_v50 = vsel %vm3150_vm7, %v1536_v10, %v1540_v29  ;;  %v1745_v61 = vrot.slane %v1492_v11, 5  ;;  %v1549_v62 = vor.u32 %v1548_v57, %v1545_v32  ;;  %v1562_v63 = vshll.u32 %v1492_v11, 16  ;;  %v2922_v32 = vld [vmem:[#allocation2 + $0x24] sm:$0xff] }
 0x1f8   : > { %2827 = vmatmul.msk.bf16.gmra.mxu2 %vm1604_vm0, %v2920_v51  ;;  %v1595_v54 = vunpack.c.l.b16 %v1541_v50  ;;  %v1559_v36 = vor.u32 %v1558_v14, %v1554_v53  ;;  %v1743_v0 = vsel %vm3113_vm4, %v2832_v58, %v1742_v46  ;;  %v2148_v7 = vsel %vm1617_vm11, %v2869_v28, 0 }
 0x1f9   : > { %v1746_v2 = vsel %vm3113_vm4, %v1744_v35, %v1745_v61  ;;  %v1550_v12 = vrot.slane %v1549_v62, 4  ;;  %v1564_v44 = vrot.slane %v1562_v63, 5  ;;  %v1760_v18 = vunpack.c.l.b16 %v1743_v0  ;;  %2157 = vmatpush.bf16.msrb.mxu3 %v2148_v7  ;;  %v2895_v61 = vld [vmem:[%s3832_s3 + $0x1c] sm:$0xf]  ;;  %v2077_v7 = vld [vmem:[#allocation2 + $0xc] sm:$0xe] }
 0x1fa   : > { %v1601_v59 = vpack.c.b16 %v1595_v54, %v1594_v38  ;;  %v1560_v16 = vrot.slane %v1559_v36, 4  ;;  %v1761_v24 = vunpack.c.l.b16 %v1746_v2  ;;  %v1749_v21 = vrot.slane %v1488_v4, 5  ;;  %v2927_v2 = vld [vmem:[#allocation2 + $0x18] sm:$0xff] }
 0x1fb   : > { %v1567_v23 = vshrl.u32 %v1487_v5, 16  ;;  %v1555_v60 = vsel %vm3150_vm7, %v1550_v12, %v1554_v53  ;;  %v1570_v48 = vshll.u32 %v1487_v5, 16  ;;  %v2515_v1 = vsel %vm1617_vm11, %v2904_v37, 0 }
 0x1fc   : > { %v1565_v20 = vsel %vm3150_vm7, %v1560_v16, %v1564_v44  ;;  %v1766_v17 = vpack.c.b16 %v1761_v24, %v1760_v18  ;;  %v1576_v22 = vshll.u32 %v1488_v4, 16  ;;  %v1580_v52 = vshrl.u32 %v1488_v4, 16  ;;  %2524 = vmatpush.bf16.msra.mxu2 %v2515_v1  ;;  %v3626_v4 = vld [vmem:[#allocation2 + $0x1c] sm:$0xf] }
 0x1fd   : > { %v2833_v6 = vrot.slane %v1717_v19, 9  ;;  %v1596_v42 = vunpack.c.l.b16 %v1555_v60  ;;  %v1597_v25 = vunpack.c.l.b16 %v1565_v20  ;;  %v1751_v13 = vrot.slane %v1749_v21, 4 }
 0x1fe   : > { %v1752_v15 = vrot.slane %v1493_v45, 5  ;;  %v1916_v51 = vshrl.u32 %v1903_v56, 16  ;;  %v1919_v31 = vshll.u32 %v1903_v56, 16  ;;  %v1925_v49 = vshll.u32 %v3607_v26, 16 }
 0x1ff   : > { %2836 = vmatmul.msk.bf16.gmra.mxu3 %vm1604_vm0, %v1765_v47  ;;  %v1929_v33 = vshrl.u32 %v3607_v26, 16  ;;  %v1569_v8 = vrot.slane %v1567_v23, 4  ;;  %v1572_v10 = vrot.slane %v1570_v48, 5  ;;  %v1578_v29 = vrot.slane %v1576_v22, 5 }
 0x200   : > { %v1582_v34 = vrot.slane %v1580_v52, 4  ;;  %v1602_v40 = vpack.c.b16 %v1597_v25, %v1596_v42  ;;  %v1750_v41 = vsel %vm3113_vm4, %v2833_v6, %v1749_v21  ;;  %v1753_v43 = vsel %vm3113_vm4, %v1751_v13, %v1752_v15  ;;  %v1908_v13 = vld [vmem:[#allocation2 + $0x20] sm:$0x1] }
 0x201   : > { %v1586_v55 = vshll.u32 %v1493_v45, 16  ;;  %v1918_v27 = vrot.slane %v1916_v51, 4  ;;  %v1921_v47 = vrot.slane %v1919_v31, 5  ;;  %v1927_v50 = vrot.slane %v1925_v49, 5 }
 0x202   : > { %v1931_v46 = vrot.slane %v1929_v33, 4  ;;  %v1573_v38 = vor.u32 %v1572_v10, %v1569_v8  ;;  %v1583_v11 = vor.u32 %v1582_v34, %v1578_v29  ;;  %v1762_v54 = vunpack.c.l.b16 %v1750_v41 }
 0x203   : > { %v1763_v57 = vunpack.c.l.b16 %v1753_v43  ;;  %v1588_v53 = vrot.slane %v1586_v55, 5  ;;  %v1922_v14 = vor.u32 %v1921_v47, %v1918_v27  ;;  %v1935_v35 = vshll.u32 %v1905_v30, 16  ;;  %v1909_v27 = vld [vmem:[#allocation2 + $0x24] sm:$0xf]  ;;  %v3647_v47 = vld [vmem:[#allocation2 + $0x28] sm:$0xf] }
 0x204   : > { %v1932_v58 = vor.u32 %v1931_v46, %v1927_v50  ;;  %v1574_v62 = vrot.slane %v1573_v38, 4  ;;  %v1584_v36 = vrot.slane %v1583_v11, 4  ;;  %v2405_v63 = vsel %vm1617_vm11, %v2895_v61, 0 }
 0x205   : > { %2807 = vmatmul.msk.bf16.gmra.mxu1 %vm1604_vm0, %v1601_v59  ;;  %v2874_v59 = vld [vmem:[%s3832_s3 + $0x18] sm:$0xf]  ;;  %v1923_v5 = vrot.slane %v1922_v14, 4  ;;  %v1937_v16 = vrot.slane %v1935_v35, 5  ;;  %v1767_v44 = vpack.c.b16 %v1763_v57, %v1762_v54  ;;  %v2095_v24 = vrot.slane %v3607_v26, 5 }
 0x206   : > { %v2231_v0 = vsel %vm1617_vm11, %v2874_v59, 0  ;;  %2414 = vmatpush.bf16.msra.mxu1 %v2405_v63  ;;  %v1933_v12 = vrot.slane %v1932_v58, 4  ;;  %v1579_v28 = vsel %vm3150_vm7, %v1574_v62, %v1578_v29  ;;  %v1589_v18 = vsel %vm3150_vm7, %v1584_v36, %v1588_v53 }
 0x207   : > { %2240 = vmatpush.bf16.msrb.mxu0 %v2231_v0  ;;  %v1949_v23 = vshll.u32 %v3626_v4, 16  ;;  %v1953_v37 = vshrl.u32 %v3626_v4, 16  ;;  %v1598_v60 = vunpack.c.l.b16 %v1579_v28  ;;  %v1599_v20 = vunpack.c.l.b16 %v1589_v18 }
 0x208   : > { %2828 = vmatmul.msk.bf16.gmra.mxu2 %vm1604_vm0, %v2921_v3  ;;  %v1906_v3 = vld [vmem:[#allocation2 + $0x18] sm:$0xf]  ;;  %v1928_v45 = vsel %vm3150_vm7, %v1923_v5, %v1927_v50  ;;  %v1938_v48 = vsel %vm3150_vm7, %v1933_v12, %v1937_v16  ;;  %v2865_v1 = vrot.slane %v2077_v7, 9  ;;  %v2098_v22 = vrot.slane %v1905_v30, 5  ;;  %v2929_v7 = vld [vmem:[#allocation2 + $0x30] sm:$0xff] }
 0x209   : > { %v1940_v19 = vshrl.u32 %v1906_v3, 16  ;;  %v1943_v21 = vshll.u32 %v1906_v3, 16  ;;  %v1951_v26 = vrot.slane %v1949_v23, 5  ;;  %v1955_v6 = vrot.slane %v1953_v37, 4  ;;  %v2078_v30 = vld [vmem:[#allocation2 + $0x18] sm:$0xe] }
 0x20a   : > { %2891 = vmatmul.msk.bf16.vlgmr.msrb.gmra.mxu0 %vm1604_vm0, %v2927_v2  ;;  %v2013_v42 = vunpack.c.l.b16 %v1928_v45  ;;  %v2014_v25 = vunpack.c.l.b16 %v1938_v48  ;;  %v1603_v15 = vpack.c.b16 %v1599_v20, %v1598_v60  ;;  %v2096_v51 = vsel %vm3113_vm4, %v2865_v1, %v2095_v24  ;;  %v2923_v2 = vld [vmem:[#allocation2 + $0xc] sm:$0xff]  ;;  %v1913_v20 = vld [vmem:[#allocation2 + $0x34] sm:$0xf] }
 0x20b   : > { %v1942_v52 = vrot.slane %v1940_v19, 4  ;;  %v1945_v56 = vrot.slane %v1943_v21, 5  ;;  %v1956_v33 = vor.u32 %v1955_v6, %v1951_v26  ;;  %v1959_v8 = vshll.u32 %v1908_v13, 16  ;;  %v1911_v3 = vld [vmem:[#allocation2 + $0x2c] sm:$0x1] }
 0x20c   : > { %v2021_v10 = vpack.c.b16 %v2014_v25, %v2013_v42  ;;  %v2123_v29 = vunpack.c.l.b16 %v2096_v51  ;;  %v2102_v11 = vrot.slane %v3626_v4, 5  ;;  %v1967_v54 = vshll.u32 %v1909_v27, 16  ;;  %v1912_v60 = vld [vmem:[#allocation2 + $0x30] sm:$0xf]  ;;  %v2924_v51 = vld [vmem:[#allocation2 + $0x18] sm:$0xff] }
 0x20d   : > { %v1946_v49 = vor.u32 %v1945_v56, %v1942_v52  ;;  %v1957_v43 = vrot.slane %v1956_v33, 4  ;;  %v1961_v55 = vrot.slane %v1959_v8, 5  ;;  %v1973_v57 = vshll.u32 %v3647_v47, 16 }
 0x20e   : > { %v1977_v53 = vshrl.u32 %v3647_v47, 16  ;;  %v2866_v35 = vrot.slane %v2078_v30, 9  ;;  %v2104_v61 = vrot.slane %v2102_v11, 4  ;;  %v2105_v59 = vrot.slane %v1908_v13, 5 }
 0x20f   : > { %2837 = vmatmul.msk.bf16.gmra.mxu3 %vm1604_vm0, %v1766_v17  ;;  %v2097_v17 = vrot.slane %v2095_v24, 4  ;;  %v1947_v41 = vrot.slane %v1946_v49, 4  ;;  %v1962_v38 = vsel %vm3150_vm7, %v1957_v43, %v1961_v55  ;;  %v1969_v36 = vrot.slane %v1967_v54, 5  ;;  %v2080_v54 = vld [vmem:[#allocation2 + $0x30] sm:$0xe] }
 0x210   : > { %v2016_v58 = vunpack.c.l.b16 %v1962_v38  ;;  %v1975_v63 = vrot.slane %v1973_v57, 5  ;;  %v1979_v0 = vrot.slane %v1977_v53, 4  ;;  %v2103_v4 = vsel %vm3113_vm4, %v2866_v35, %v2102_v11 }
 0x211   : > { %v2099_v31 = vsel %vm3113_vm4, %v2097_v17, %v2098_v22  ;;  %v1952_v46 = vsel %vm3150_vm7, %v1947_v41, %v1951_v26  ;;  %v2106_v5 = vsel %vm3113_vm4, %v2104_v61, %v2105_v59  ;;  %v1983_v28 = vshll.u32 %v1911_v3, 16  ;;  %v2079_v17 = vld [vmem:[#allocation2 + $0x24] sm:$0xe] }
 0x212   : > { %v2124_v34 = vunpack.c.l.b16 %v2099_v31  ;;  %v2015_v14 = vunpack.c.l.b16 %v1952_v46  ;;  %v2125_v18 = vunpack.c.l.b16 %v2103_v4  ;;  %v2126_v24 = vunpack.c.l.b16 %v2106_v5 }
 0x213   : > { %v1985_v23 = vrot.slane %v1983_v28, 5  ;;  %v2109_v45 = vrot.slane %v3647_v47, 5  ;;  %v1988_v22 = vshrl.u32 %v1912_v60, 16  ;;  %v1991_v52 = vshll.u32 %v1912_v60, 16 }
 0x214   : > { %v2131_v50 = vpack.c.b16 %v2124_v34, %v2123_v29  ;;  %v2022_v12 = vpack.c.b16 %v2016_v58, %v2015_v14  ;;  %v2132_v37 = vpack.c.b16 %v2126_v24, %v2125_v18  ;;  %v1997_v56 = vshll.u32 %v1913_v20, 16 }
 0x215   : > { %2808 = vmatmul.msk.bf16.gmra.mxu1 %vm1604_vm0, %v1602_v40  ;;  %v2928_v40 = vld [vmem:[#allocation2 + $0x24] sm:$0xff]  ;;  %v2001_v26 = vshrl.u32 %v1913_v20, 16  ;;  %v2867_v6 = vrot.slane %v2079_v17, 9  ;;  %v2111_v42 = vrot.slane %v2109_v45, 4  ;;  %v2112_v25 = vrot.slane %v1911_v3, 5 }
 0x216   : > { %v1990_v31 = vrot.slane %v1988_v22, 4  ;;  %v1993_v49 = vrot.slane %v1991_v52, 5  ;;  %v1999_v33 = vrot.slane %v1997_v56, 5  ;;  %v2868_v14 = vrot.slane %v2080_v54, 9  ;;  %v2444_v3 = vld [vmem:[#allocation2 + $0x18] sm:$0xe] }
 0x217   : > { %v2003_v8 = vrot.slane %v2001_v26, 4  ;;  %v2110_v29 = vsel %vm3113_vm4, %v2867_v6, %v2109_v45  ;;  %v2113_v34 = vsel %vm3113_vm4, %v2111_v42, %v2112_v25  ;;  %v2900_v28 = vrot.slane %v2444_v3, 9  ;;  %v2926_v56 = vld [vmem:[#allocation2 + $0x30] sm:$0xff]  ;;  %v2274_v25 = vld [vmem:[#allocation2 + $0x28] sm:$0xf] }
 0x218   : > { %2829 = vmatmul.msk.bf16.gmra.mxu2 %vm1604_vm0, %v2922_v32  ;;  %v1964_v32 = vshrl.u32 %v1909_v27, 16  ;;  %v1994_v41 = vor.u32 %v1993_v49, %v1990_v31  ;;  %v2127_v27 = vunpack.c.l.b16 %v2110_v29  ;;  %v2128_v47 = vunpack.c.l.b16 %v2113_v34 }
 0x219   : > { %v2004_v43 = vor.u32 %v2003_v8, %v1999_v33  ;;  %v2469_v31 = vrot.slane %v2274_v25, 5  ;;  %v2275_v8 = vld [vmem:[#allocation2 + $0x2c] sm:$0x1] }
 0x21a   : > { %2892 = vmatmul.msk.bf16.gmra.mxu0 %vm1604_vm0, %v2928_v40  ;;  %v1966_v62 = vrot.slane %v1964_v32, 4  ;;  %v1995_v46 = vrot.slane %v1994_v41, 4  ;;  %v2133_v30 = vpack.c.b16 %v2128_v47, %v2127_v27  ;;  %v2116_v32 = vrot.slane %v1913_v20, 5 }
 0x21b   : > { %v2005_v38 = vrot.slane %v2004_v43, 4  ;;  %v2320_v41 = vshrl.u32 %v2274_v25, 16  ;;  %v2472_v27 = vrot.slane %v2275_v8, 5 }
 0x21c   : > { %v1970_v16 = vor.u32 %v1969_v36, %v1966_v62  ;;  %v2000_v57 = vsel %vm3150_vm7, %v1995_v46, %v1999_v33  ;;  %v2118_v58 = vrot.slane %v2116_v32, 4  ;;  %v2925_v62 = vld [vmem:[#allocation2 + $0x24] sm:$0xff]  ;;  %v2271_v36 = vld [vmem:[#allocation2 + $0x1c] sm:$0xf] }
 0x21d   : > { %v2019_v61 = vunpack.c.l.b16 %v2000_v57  ;;  %v2462_v4 = vrot.slane %v2271_v36, 5 }
 0x21e   : > { %v1971_v19 = vrot.slane %v1970_v16, 4  ;;  %v2272_v16 = vld [vmem:[#allocation2 + $0x20] sm:$0x1] }
 0x21f   : > { %2838 = vmatmul.msk.bf16.gmra.mxu3 %vm1604_vm0, %v1767_v44  ;;  %v1980_v44 = vor.u32 %v1979_v0, %v1975_v63  ;;  %v2464_v18 = vrot.slane %v2462_v4, 4  ;;  %v2465_v24 = vrot.slane %v2272_v16, 5  ;;  %v2463_v60 = vsel %vm3113_vm4, %v2900_v28, %v2462_v4 }
 0x220   : > { %v1976_v48 = vsel %vm3150_vm7, %v1971_v19, %v1975_v63  ;;  %v2117_v63 = vsel %vm3113_vm4, %v2868_v14, %v2116_v32  ;;  %v2490_v22 = vunpack.c.l.b16 %v2463_v60  ;;  %v2302_v42 = vshll.u32 %v2272_v16, 16 }
 0x221   : > { %v1981_v21 = vrot.slane %v1980_v44, 4  ;;  %v2017_v13 = vunpack.c.l.b16 %v1976_v48  ;;  %v2129_v5 = vunpack.c.l.b16 %v2117_v63  ;;  %v2270_v44 = vld [vmem:[#allocation2 + $0x18] sm:$0xf]  ;;  %v2466_v20 = vsel %vm3113_vm4, %v2464_v18, %v2465_v24  ;;  %v2276_v18 = vld [vmem:[#allocation2 + $0x30] sm:$0xf] }
 0x222   : > { %v2286_v19 = vshll.u32 %v2270_v44, 16  ;;  %v2491_v52 = vunpack.c.l.b16 %v2466_v20  ;;  %v2304_v33 = vrot.slane %v2302_v42, 5  ;;  %v2322_v32 = vrot.slane %v2320_v41, 4  ;;  %v2278_v24 = vld [vmem:[#allocation2 + $0x38] sm:$0x1] }
 0x223   : > { %v1986_v1 = vsel %vm3150_vm7, %v1981_v21, %v1985_v23  ;;  %v2292_v23 = vshll.u32 %v2271_v36, 16  ;;  %v2479_v20 = vrot.slane %v2278_v24, 5 }
 0x224   : > { %v2288_v48 = vrot.slane %v2286_v19, 5 }
 0x225   : > { %2809 = vmatmul.msk.bf16.gmra.mxu1 %vm1604_vm0, %v1603_v15  ;;  %v2018_v15 = vunpack.c.l.b16 %v1986_v1  ;;  %v2294_v1 = vrot.slane %v2292_v23, 5  ;;  %v2331_v23 = vshrl.u32 %v2276_v18, 16 }
 0x227   : > { %v2023_v40 = vpack.c.b16 %v2018_v15, %v2017_v13  ;;  %v2498_v13 = vpack.c.b16 %v2491_v52, %v2490_v22  ;;  %v2273_v15 = vld [vmem:[#allocation2 + $0x24] sm:$0xf] }
 0x228   : > { %2861 = vmatmul.msk.bf16.vlgmr.msrb.gmra.mxu2 %vm1604_vm0, %v2021_v10  ;;  %v1914_v10 = vld [vmem:[#allocation2 + $0x38] sm:$0x1]  ;;  %v2307_v29 = vshrl.u32 %v2273_v15, 16  ;;  %v2310_v34 = vshll.u32 %v2273_v15, 16 }
 0x229   : > { %v2007_v55 = vshll.u32 %v1914_v10, 16  ;;  %v2119_v35 = vrot.slane %v1914_v10, 5  ;;  %v2445_v10 = vld [vmem:[#allocation2 + $0x24] sm:$0xe] }
 0x22a   : > { %2893 = vmatmul.msk.bf16.gmra.mxu0 %vm1604_vm0, %v2929_v7  ;;  %v2283_v7 = vshrl.u32 %v2270_v44, 16  ;;  %v2901_v43 = vrot.slane %v2445_v10, 9  ;;  %v2446_v44 = vld [vmem:[#allocation2 + $0x30] sm:$0xe]  ;;  %v2350_v10 = vshll.u32 %v2278_v24, 16 }
 0x22b   : > { %v2009_v11 = vrot.slane %v2007_v55, 5  ;;  %v2120_v0 = vsel %vm3113_vm4, %v2118_v58, %v2119_v35  ;;  %v2471_v55 = vrot.slane %v2469_v31, 4 }
 0x22c   : > { %v2285_v45 = vrot.slane %v2283_v7, 4 }
 0x22d   : > { %v2010_v53 = vsel %vm3150_vm7, %v2005_v38, %v2009_v11  ;;  %v2309_v38 = vrot.slane %v2307_v29, 4  ;;  %v2312_v11 = vrot.slane %v2310_v34, 5  ;;  %v2473_v14 = vsel %vm3113_vm4, %v2471_v55, %v2472_v27  ;;  %v2280_v34 = vld [vmem:[#allocation2 + $0x40] sm:$0xf] }
 0x22e   : > { %v2020_v59 = vunpack.c.l.b16 %v2010_v53  ;;  %v2289_v26 = vor.u32 %v2288_v48, %v2285_v45  ;;  %v2470_v53 = vsel %vm3113_vm4, %v2901_v43, %v2469_v31 }
 0x22f   : > { %2870 = vmatmul.msk.bf16.vlgmr.msrb.gmra.mxu3 %vm1604_vm0, %v2131_v50  ;;  %v2930_v50 = vld [vmem:[#allocation2 + $0x3c] sm:$0xff]  ;;  %v2313_v58 = vor.u32 %v2312_v11, %v2309_v38  ;;  %v2492_v35 = vunpack.c.l.b16 %v2470_v53 }
 0x230   : > { %v2447_v38 = vld [vmem:[#allocation2 + $0x3c] sm:$0xe] }
 0x231   : > { %v2314_v4 = vrot.slane %v2313_v58, 4  ;;  %v2279_v11 = vld [vmem:[#allocation2 + $0x3c] sm:$0xf] }
 0x232   : > { %v2355_v58 = vshrl.u32 %v2279_v11, 16 }
 0x235   : > { %2856 = vmatmul.msk.bf16.vlgmr.msrb.gmra.mxu1 %vm1604_vm0, %v2923_v2  ;;  %v2024_v2 = vpack.c.b16 %v2020_v59, %v2019_v61  ;;  %v2493_v61 = vunpack.c.l.b16 %v2473_v14 }
 0x238   : > { %2862 = vmatmul.msk.bf16.gmra.mxu2 %vm1604_vm0, %v2022_v12  ;;  %v2130_v12 = vunpack.c.l.b16 %v2120_v0  ;;  %v2277_v0 = vld [vmem:[#allocation2 + $0x34] sm:$0xf] }
 0x239   : > { %v2476_v28 = vrot.slane %v2277_v0, 5  ;;  %v2340_v45 = vshll.u32 %v2277_v0, 16  ;;  %v2344_v48 = vshrl.u32 %v2277_v0, 16 }
 0x23a   : > { %2894 = vmatmul.msk.bf16.gmra.mxu0 %vm1604_vm0, %v2930_v50  ;;  %v2134_v21 = vpack.c.b16 %v2130_v12, %v2129_v5  ;;  %v2499_v5 = vpack.c.b16 %v2493_v61, %v2492_v35  ;;  %v2358_v35 = vshll.u32 %v2279_v11, 16  ;;  %v2364_v61 = vshll.u32 %v2280_v34, 16 }
 0x23b   : > { %v2478_v60 = vrot.slane %v2476_v28, 4  ;;  %v2346_v15 = vrot.slane %v2344_v48, 4 }
 0x23f   : > { %2871 = vmatmul.msk.bf16.gmra.mxu3 %vm1604_vm0, %v2132_v37  ;;  %v2296_v37 = vshrl.u32 %v2271_v36, 16 }
 0x241   : > { %v2298_v17 = vrot.slane %v2296_v37, 4  ;;  %v2334_v37 = vshll.u32 %v2276_v18, 16 }
 0x243   : > { %v2299_v6 = vor.u32 %v2298_v17, %v2294_v1 }
 0x245   : > { %2857 = vmatmul.msk.bf16.gmra.mxu1 %vm1604_vm0, %v2924_v51  ;;  %v2290_v51 = vrot.slane %v2289_v26, 4  ;;  %v2300_v49 = vrot.slane %v2299_v6, 4  ;;  %v2333_v26 = vrot.slane %v2331_v23, 4  ;;  %v2336_v6 = vrot.slane %v2334_v37, 5 }
 0x247   : > { %v2295_v47 = vsel %vm3150_vm7, %v2290_v51, %v2294_v1  ;;  %v2305_v50 = vsel %vm3150_vm7, %v2300_v49, %v2304_v33  ;;  %v2337_v49 = vor.u32 %v2336_v6, %v2333_v26 }
 0x248   : > { %2863 = vmatmul.msk.bf16.gmra.mxu2 %vm1604_vm0, %v2023_v40  ;;  %v2316_v40 = vshll.u32 %v2274_v25, 16  ;;  %v2380_v54 = vunpack.c.l.b16 %v2295_v47  ;;  %v2381_v57 = vunpack.c.l.b16 %v2305_v50  ;;  %v2480_v25 = vsel %vm3113_vm4, %v2478_v60, %v2479_v20 }
 0x249   : > { %v2495_v31 = vunpack.c.l.b16 %v2480_v25  ;;  %v2338_v55 = vrot.slane %v2337_v49, 4  ;;  %v2352_v47 = vrot.slane %v2350_v10, 5  ;;  %v2483_v50 = vrot.slane %v2280_v34, 5 }
 0x24a   : > { %v2388_v36 = vpack.c.b16 %v2381_v57, %v2380_v54  ;;  %v2903_v54 = vrot.slane %v2447_v38, 9 }
 0x24b   : > { %v2485_v57 = vrot.slane %v2483_v50, 4 }
 0x24f   : > { %2872 = vmatmul.msk.bf16.gmra.mxu3 %vm1604_vm0, %v2133_v30  ;;  %v2318_v30 = vrot.slane %v2316_v40, 5 }
 0x251   : > { %v2323_v59 = vor.u32 %v2322_v32, %v2318_v30  ;;  %v2319_v7 = vsel %vm3150_vm7, %v2314_v4, %v2318_v30  ;;  %v2484_v4 = vsel %vm3113_vm4, %v2903_v54, %v2483_v50 }
 0x252   : > { %v2382_v52 = vunpack.c.l.b16 %v2319_v7  ;;  %v2496_v18 = vunpack.c.l.b16 %v2484_v4 }
 0x253   : > { %v2324_v12 = vrot.slane %v2323_v59, 4  ;;  %v2368_v59 = vshrl.u32 %v2280_v34, 16 }
 0x255   : > { %2858 = vmatmul.msk.bf16.gmra.mxu1 %vm1604_vm0, %v2925_v62  ;;  %v2326_v62 = vshll.u32 %v2275_v8, 16 }
 0x257   : > { %v2328_v16 = vrot.slane %v2326_v62, 5 }
 0x258   : > { %2864 = vmatmul.msk.bf16.gmra.mxu2 %vm1604_vm0, %v2024_v2 }
 0x259   : > { %v2329_v19 = vsel %vm3150_vm7, %v2324_v12, %v2328_v16  ;;  %v2357_v12 = vrot.slane %v2355_v58, 4  ;;  %v2360_v16 = vrot.slane %v2358_v35, 5 }
 0x25f   : > { %2873 = vmatmul.msk.bf16.gmra.mxu3 %vm1604_vm0, %v2134_v21  ;;  %v2902_v21 = vrot.slane %v2446_v44, 9  ;;  %v2366_v44 = vrot.slane %v2364_v61, 5 }
 0x261   : > { %v2477_v42 = vsel %vm3113_vm4, %v2902_v21, %v2476_v28  ;;  %v2370_v28 = vrot.slane %v2368_v59, 4  ;;  %v2361_v21 = vor.u32 %v2360_v16, %v2357_v12 }
 0x262   : > { %v2494_v51 = vunpack.c.l.b16 %v2477_v42 }
 0x263   : > { %v2371_v23 = vor.u32 %v2370_v28, %v2366_v44  ;;  %v2362_v48 = vrot.slane %v2361_v21, 4 }
 0x264   : > { %v2500_v43 = vpack.c.b16 %v2495_v31, %v2494_v51 }
 0x265   : > { %2859 = vmatmul.msk.bf16.gmra.mxu1 %vm1604_vm0, %v2926_v56  ;;  %v2383_v56 = vunpack.c.l.b16 %v2329_v19  ;;  %v2372_v9 = vrot.slane %v2371_v23, 4 }
 0x267   : > { %v2389_v33 = vpack.c.b16 %v2383_v56, %v2382_v52  ;;  %v2367_v56 = vsel %vm3150_vm7, %v2362_v48, %v2366_v44 }
 0x268   : > { %2905 = vmatmul.msk.bf16.vlgmr.msra.gmra.mxu2 %vm1604_vm0, %v2498_v13  ;;  %v2342_v13 = vrot.slane %v2340_v45, 5  ;;  %v2386_v25 = vunpack.c.l.b16 %v2367_v56 }
 0x26a   : > { %v2347_v8 = vor.u32 %v2346_v15, %v2342_v13  ;;  %v2343_v30 = vsel %vm3150_vm7, %v2338_v55, %v2342_v13 }
 0x26b   : > { %v1694_v46 = vpop.f32.mrf.mxu2  ;;  %v2384_v0 = vunpack.c.l.b16 %v2343_v30 }
 0x26c   : > { %v2348_v27 = vrot.slane %v2347_v8, 4 }
 0x26e   : > { %v2353_v32 = vsel %vm3150_vm7, %v2348_v27, %v2352_v47 }
 0x272   : > { %v1630_v63 = vpop.f32.mrf.mxu1 }
 0x273   : > { %v3704_v2 = vadd.f32 %v1694_v46, %v1630_v63  ;;  %v1696_v3 = vpop.f32.mrf.mxu2  ;;  %v2281_v46 = vld [vmem:[#allocation2 + $0x44] sm:$0x1]  ;;  %v1792_v63 = vpop.f32.mrf.mxu3 }
 0x274   : > { %v2486_v53 = vrot.slane %v2281_v46, 5  ;;  %v2374_v37 = vshll.u32 %v2281_v46, 16 }
 0x275   : > { %2896 = vmatmul.msk.bf16.vlgmr.msra.gmra.mxu1 %vm1604_vm0, %v2388_v36  ;;  %v1812_v59 = vadd.f32 %v1792_v63, %v3704_v2  ;;  %v3773_v63 = vld [vmem:[%s3833_s4] ss:$0 sm:$0xff] }
 0x278   : > { %2906 = vmatmul.msk.bf16.gmra.mxu2 %vm1604_vm0, %v2499_v5  ;;  %v2487_v5 = vsel %vm3113_vm4, %v2485_v57, %v2486_v53 }
 0x279   : > { %v2497_v24 = vunpack.c.l.b16 %v2487_v5 }
 0x27a   : > { %v1632_v1 = vpop.f32.mrf.mxu1 }
 0x27b   : > { %v3712_v17 = vadd.f32 %v1696_v3, %v1632_v1  ;;  %v1699_v22 = vpop.f32.mrf.mxu2  ;;  %v2385_v3 = vunpack.c.l.b16 %v2353_v32  ;;  %v2501_v45 = vpack.c.b16 %v2497_v24, %v2496_v18  ;;  %v2376_v1 = vrot.slane %v2374_v37, 5 }
 0x27d   : > { %v2390_v7 = vpack.c.b16 %v2385_v3, %v2384_v0  ;;  %v2377_v26 = vsel %vm3150_vm7, %v2372_v9, %v2376_v1 }
 0x27e   : > { %v2387_v13 = vunpack.c.l.b16 %v2377_v26 }
 0x280   : > { %v2391_v51 = vpack.c.b16 %v2387_v13, %v2386_v25 }
 0x282   : > { %v1635_v29 = vpop.f32.mrf.mxu1 }
 0x283   : > { %v3718_v40 = vadd.f32 %v1699_v22, %v1635_v29  ;;  %v1701_v41 = vpop.f32.mrf.mxu2  ;;  %v1794_v22 = vpop.f32.mrf.mxu3 }
 0x284   : > { %v1813_v16 = vadd.f32 %v1794_v22, %v3712_v17 }
 0x285   : > { %2897 = vmatmul.msk.bf16.gmra.mxu1 %vm1604_vm0, %v2389_v33 }
 0x287   : > { %v2242_v35 = vpop.f32.mrf.mxu0 }
 0x288   : > { %2907 = vmatmul.msk.bf16.gmra.mxu2 %vm1604_vm0, %v2500_v43 }
 0x28a   : > { %v1637_v14 = vpop.f32.mrf.mxu1 }
 0x28b   : > { %v3726_v62 = vadd.f32 %v1701_v41, %v1637_v14  ;;  %v1704_v36 = vpop.f32.mrf.mxu2  ;;  %v1797_v15 = vpop.f32.mrf.mxu3 }
 0x28c   : > { %v1814_v23 = vadd.f32 %v1797_v15, %v3718_v40 }
 0x28f   : > { %v2244_v5 = vpop.f32.mrf.mxu0 }
 0x292   : > { %v1640_v19 = vpop.f32.mrf.mxu1 }
 0x293   : > { %v3732_v60 = vadd.f32 %v1704_v36, %v1640_v19  ;;  %v1706_v20 = vpop.f32.mrf.mxu2  ;;  %v1799_v10 = vpop.f32.mrf.mxu3 }
 0x294   : > { %v1815_v26 = vadd.f32 %v1799_v10, %v3726_v62 }
 0x295   : > { %2898 = vmatmul.msk.bf16.gmra.mxu1 %vm1604_vm0, %v2390_v7 }
 0x298   : > { %2908 = vmatmul.msk.bf16.gmra.mxu2 %vm1604_vm0, %v2501_v45 }
 0x29a   : > { %v1642_v52 = vpop.f32.mrf.mxu1 }
 0x29b   : > { %v3740_v6 = vadd.f32 %v1706_v20, %v1642_v52  ;;  %v1709_v42 = vpop.f32.mrf.mxu2  ;;  %v1802_v43 = vpop.f32.mrf.mxu3 }
 0x29c   : > { %v2247_v20 = vpop.f32.mrf.mxu0 }
 0x2a2   : > { %v1645_v31 = vpop.f32.mrf.mxu1 }
 0x2a3   : > { %v3742_v49 = vadd.f32 %v1709_v42, %v1645_v31  ;;  %v1711_v33 = vpop.f32.mrf.mxu2  ;;  %v3747_v47 = vpop.f32.mrf.mxu3 }
 0x2a5   : > { %2899 = vmatmul.msk.bf16.gmra.mxu1 %vm1604_vm0, %v2391_v51 }
 0x2aa   : > { %v1647_v8 = vpop.f32.mrf.mxu1 }
 0x2ab   : > { %v3745_v29 = vadd.f32 %v1711_v33, %v1647_v8  ;;  %v2049_v34 = vpop.f32.mrf.mxu2  ;;  %v3749_v38 = vpop.f32.mrf.mxu3 }
 0x2ac   : > { %v2249_v33 = vpop.f32.mrf.mxu0 }
 0x2b2   : > { %v1875_v39 = vpop.f32.mrf.mxu1 }
 0x2b3   : > { %v2051_v41 = vpop.f32.mrf.mxu2  ;;  %v3753_v54 = vpop.f32.mrf.mxu3  ;;  %v1895_v0 = vadd.f32 %v1875_v39, %v1812_v59 }
 0x2b5   : > { %v2069_v4 = vadd.f32 %v2049_v34, %v1895_v0 }
 0x2ba   : > { %v1877_v55 = vpop.f32.mrf.mxu1 }
 0x2bb   : > { %v2054_v27 = vpop.f32.mrf.mxu2  ;;  %v2159_v14 = vpop.f32.mrf.mxu3  ;;  %v1896_v18 = vadd.f32 %v1877_v55, %v1813_v16 }
 0x2bc   : > { %v2179_v28 = vadd.f32 %v2159_v14, %v2069_v4 }
 0x2bd   : > { %v2070_v19 = vadd.f32 %v2051_v41, %v1896_v18 }
 0x2be   : > { %v2262_v7 = vadd.f32 %v2242_v35, %v2179_v28 }
 0x2c2   : > { %v1880_v50 = vpop.f32.mrf.mxu1 }
 0x2c3   : > { %v2056_v46 = vpop.f32.mrf.mxu2  ;;  %v2161_v3 = vpop.f32.mrf.mxu3  ;;  %v1897_v17 = vadd.f32 %v1880_v50, %v1814_v23 }
 0x2c4   : > { %v2180_v45 = vadd.f32 %v2161_v3, %v2070_v19  ;;  %v2252_v3 = vpop.f32.mrf.mxu0 }
 0x2c5   : > { %v2071_v22 = vadd.f32 %v2054_v27, %v1897_v17  ;;  %v1816_v27 = vadd.f32 %v1802_v43, %v3732_v60  ;;  %v1817_v60 = vadd.f32 %v3747_v47, %v3740_v6  ;;  %v1818_v47 = vadd.f32 %v3749_v38, %v3742_v49 }
 0x2c6   : > { %v2263_v1 = vadd.f32 %v2244_v5, %v2180_v45  ;;  %v1819_v49 = vadd.f32 %v3753_v54, %v3745_v29 }
 0x2ca   : > { %v1882_v11 = vpop.f32.mrf.mxu1 }
 0x2cb   : > { %v3751_v30 = vpop.f32.mrf.mxu2  ;;  %v2164_v24 = vpop.f32.mrf.mxu3  ;;  %v1898_v51 = vadd.f32 %v1882_v11, %v1815_v26 }
 0x2cc   : > { %v2181_v15 = vadd.f32 %v2164_v24, %v2071_v22 }
 0x2cd   : > { %v2072_v39 = vadd.f32 %v2056_v46, %v1898_v51 }
 0x2ce   : > { %v2264_v34 = vadd.f32 %v2247_v20, %v2181_v15 }
 0x2d2   : > { %v1885_v32 = vpop.f32.mrf.mxu1 }
 0x2d3   : > { %v3755_v57 = vpop.f32.mrf.mxu2  ;;  %v2166_v52 = vpop.f32.mrf.mxu3  ;;  %v1899_v11 = vadd.f32 %v1885_v32, %v1816_v27 }
 0x2d4   : > { %v2182_v35 = vadd.f32 %v2166_v52, %v2072_v39 }
 0x2d5   : > { %v2073_v46 = vadd.f32 %v3751_v30, %v1899_v11 }
 0x2d6   : > { %v2265_v4 = vadd.f32 %v2249_v33, %v2182_v35 }
 0x2da   : > { %v3757_v53 = vpop.f32.mrf.mxu1 }
 0x2db   : > { %v3759_v58 = vpop.f32.mrf.mxu2  ;;  %v2169_v62 = vpop.f32.mrf.mxu3  ;;  %v1900_v32 = vadd.f32 %v3757_v53, %v1817_v60 }
 0x2dc   : > { %v2183_v28 = vadd.f32 %v2169_v62, %v2073_v46 }
 0x2de   : > { %v2266_v30 = vadd.f32 %v2252_v3, %v2183_v28 }
 0x2e2   : > { %v3761_v61 = vpop.f32.mrf.mxu1 }
 0x2e3   : > { %v3764_v36 = vpop.f32.mrf.mxu2  ;;  %v2171_v18 = vpop.f32.mrf.mxu3  ;;  %v1901_v45 = vadd.f32 %v3761_v61, %v1818_v47 }
 0x2e5   : > { %v2075_v22 = vadd.f32 %v3759_v58, %v1901_v45 }
 0x2ea   : > { %v3766_v12 = vpop.f32.mrf.mxu1 }
 0x2eb   : > { %v2526_v44 = vpop.f32.mrf.mxu2 }
 0x2f2   : > { %v2416_v21 = vpop.f32.mrf.mxu1 }
 0x2f3   : > { %v2436_v2 = vadd.f32 %v2416_v21, %v2262_v7  ;;  %v2528_v37 = vpop.f32.mrf.mxu2  ;;  %v2074_v21 = vadd.f32 %v3755_v57, %v1900_v32 }
 0x2f5   : > { %v2546_v48 = vadd.f32 %v2526_v44, %v2436_v2  ;;  %v2254_v2 = vpop.f32.mrf.mxu0  ;;  %v2184_v53 = vadd.f32 %v2171_v18, %v2074_v21 }
 0x2f7   : > { %v2558_v9 = vadd.f32 %v3773_v63, %v2546_v48  ;;  %v2174_v48 = vpop.f32.mrf.mxu3 }
 0x2f8   : > { %v2185_v61 = vadd.f32 %v2174_v48, %v2075_v22 }
 0x2f9   : > { %vm2566_vm4 = vcmp.ge.f32.partialorder %v2558_v9, 0.0  ;;  %v2574_v56 = vmul.f32 0.2, %v2558_v9 }
 0x2fa   : > { %v2418_v40 = vpop.f32.mrf.mxu1 }
 0x2fb   : > { %v2582_v42 = vsel %vm2566_vm4, %v2558_v9, %v2574_v56  ;;  %v2437_v25 = vadd.f32 %v2418_v40, %v2263_v1  ;;  %v2531_v13 = vpop.f32.mrf.mxu2  ;;  %v2267_v1 = vadd.f32 %v2254_v2, %v2184_v53 }
 0x2fc   : > { %2590 = vst.msk [vmem:[%s3132_s29] sm:$0xff] %vm1604_vm0, %v2582_v42  ;;  %v1902_v42 = vadd.f32 %v3766_v12, %v1819_v49 }
 0x2fd   : > { %v2547_v31 = vadd.f32 %v2528_v37, %v2437_v25  ;;  %v2257_v26 = vpop.f32.mrf.mxu0 }
 0x2fe   : > { %v2268_v15 = vadd.f32 %v2257_v26, %v2185_v61  ;;  %v2076_v58 = vadd.f32 %v3764_v36, %v1902_v42 }
 0x2ff   : > { %v2559_v8 = vadd.f32 %v3773_v63, %v2547_v31  ;;  %v2176_v51 = vpop.f32.mrf.mxu3 }
 0x301   : > { %vm2567_vm7 = vcmp.ge.f32.partialorder %v2559_v8, 0.0  ;;  %v2575_v41 = vmul.f32 0.2, %v2559_v8 }
 0x302   : > { %v2421_v55 = vpop.f32.mrf.mxu1 }
 0x303   : > { %v2583_v10 = vsel %vm2567_vm7, %v2559_v8, %v2575_v41  ;;  %v2438_v50 = vadd.f32 %v2421_v55, %v2264_v34  ;;  %v2533_v14 = vpop.f32.mrf.mxu2  ;;  %v2186_v34 = vadd.f32 %v2176_v51, %v2076_v58 }
 0x304   : > { %2591 = vst.msk [vmem:[%s3132_s29 + $0x8] sm:$0xff] %vm1604_vm0, %v2583_v10 }
 0x305   : > { %v2548_v59 = vadd.f32 %v2531_v13, %v2438_v50  ;;  %v2259_v12 = vpop.f32.mrf.mxu0 }
 0x306   : > { %v2269_v55 = vadd.f32 %v2259_v12, %v2186_v34 }
 0x307   : > { %v2560_v0 = vadd.f32 %v3773_v63, %v2548_v59 }
 0x309   : > { %vm2568_vm9 = vcmp.ge.f32.partialorder %v2560_v0, 0.0  ;;  %v2576_v5 = vmul.f32 0.2, %v2560_v0 }
 0x30a   : > { %v2423_v16 = vpop.f32.mrf.mxu1 }
 0x30b   : > { %v2584_v43 = vsel %vm2568_vm9, %v2560_v0, %v2576_v5  ;;  %v2439_v44 = vadd.f32 %v2423_v16, %v2265_v4  ;;  %v2536_v7 = vpop.f32.mrf.mxu2 }
 0x30c   : > { %2592 = vst.msk [vmem:[%s3132_s29 + $0x10] sm:$0xff] %vm1604_vm0, %v2584_v43 }
 0x30d   : > { %v2549_v24 = vadd.f32 %v2533_v14, %v2439_v44 }
 0x30f   : > { %v2561_v19 = vadd.f32 %v3773_v63, %v2549_v24 }
 0x311   : > { %vm2569_vm14 = vcmp.ge.f32.partialorder %v2561_v19, 0.0  ;;  %v2577_v23 = vmul.f32 0.2, %v2561_v19 }
 0x312   : > { %v2426_v6 = vpop.f32.mrf.mxu1 }
 0x313   : > { %v2585_v37 = vsel %vm2569_vm14, %v2561_v19, %v2577_v23  ;;  %v2440_v20 = vadd.f32 %v2426_v6, %v2266_v30  ;;  %v2538_v57 = vpop.f32.mrf.mxu2 }
 0x314   : > { %2593 = vst.msk [vmem:[%s3132_s29 + $0x18] sm:$0xff] %vm1604_vm0, %v2585_v37 }
 0x315   : > { %v2550_v17 = vadd.f32 %v2536_v7, %v2440_v20 }
 0x317   : > { %v2562_v9 = vadd.f32 %v3773_v63, %v2550_v17 }
 0x319   : > { %vm2570_vm1 = vcmp.ge.f32.partialorder %v2562_v9, 0.0  ;;  %v2578_v52 = vmul.f32 0.2, %v2562_v9 }
 0x31a   : > { %v2428_v56 = vpop.f32.mrf.mxu1 }
 0x31b   : > { %v2586_v38 = vsel %vm2570_vm1, %v2562_v9, %v2578_v52  ;;  %v2441_v40 = vadd.f32 %v2428_v56, %v2267_v1  ;;  %v2541_v29 = vpop.f32.mrf.mxu2 }
 0x31c   : > { %2594 = vst.msk [vmem:[%s3132_s29 + $0x20] sm:$0xff] %vm1604_vm0, %v2586_v38 }
 0x31d   : > { %v2551_v25 = vadd.f32 %v2538_v57, %v2441_v40 }
 0x31f   : > { %v2563_v13 = vadd.f32 %v3773_v63, %v2551_v25 }
 0x321   : > { %vm2571_vm5 = vcmp.ge.f32.partialorder %v2563_v13, 0.0  ;;  %v2579_v31 = vmul.f32 0.2, %v2563_v13 }
 0x322   : > { %v2431_v54 = vpop.f32.mrf.mxu1 }
 0x323   : > { %v2587_v33 = vsel %vm2571_vm5, %v2563_v13, %v2579_v31  ;;  %v2442_v8 = vadd.f32 %v2431_v54, %v2268_v15  ;;  %v2543_v50 = vpop.f32.mrf.mxu2 }
 0x324   : > { %2595 = vst.msk [vmem:[%s3132_s29 + $0x28] sm:$0xff] %vm1604_vm0, %v2587_v33 }
 0x325   : > { %v2552_v39 = vadd.f32 %v2541_v29, %v2442_v8 }
 0x327   : > { %v2564_v41 = vadd.f32 %v3773_v63, %v2552_v39 }
 0x329   : > { %vm2572_vm6 = vcmp.ge.f32.partialorder %v2564_v41, 0.0  ;;  %v2580_v27 = vmul.f32 0.2, %v2564_v41 }
 0x32a   : > { %v2433_v36 = vpop.f32.mrf.mxu1 }
 0x32b   : > { %v2588_v62 = vsel %vm2572_vm6, %v2564_v41, %v2580_v27  ;;  %v2443_v10 = vadd.f32 %v2433_v36, %v2269_v55 }
 0x32c   : > { %2596 = vst.msk [vmem:[%s3132_s29 + $0x30] sm:$0xff] %vm1604_vm0, %v2588_v62 }
 0x32d   : > { %v2553_v14 = vadd.f32 %v2543_v50, %v2443_v10 }
 0x32f   : > { %v2565_v35 = vadd.f32 %v3773_v63, %v2553_v14 }
 0x331   : > { %vm2573_vm8 = vcmp.ge.f32.partialorder %v2565_v35, 0.0  ;;  %v2581_v11 = vmul.f32 0.2, %v2565_v35 }
 0x333   : > { %v2589_v59 = vsel %vm2573_vm8, %v2565_v35, %v2581_v11 }
 0x334   : > { %2597 = vst.msk [vmem:[%s3132_s29 + $0x38] sm:$0xff] %vm1604_vm0, %v2589_v59 }
 0x335 PF: > { %s15_s22 = sadd.s32 1, %s3016_s22   ;;  %s3847_s18 = smov %s3008_s20 }
 0x336   : > { %p12_p10 = scmp.ge.s32.totalorder %s15_s22, 10   ;;  %s3848_s19 = smov %s3012_s21 }
 0x337   : > { %s3849_s20 = smov %s3852_s23  ;;  %s3850_s21 = smov %s3856_s24 }
 0x338   :  { %14 = sbr.rel (!%p12_p10) target bundleno = 3 (0x3), region = 97 }

</bundles_post_ra>
